<compile_context>
chip_gen: v6e
topology: v6e:2x2x1
jax: 0.10.0
libtpu: 0.0.40
codegen_flags: <defaults>
</compile_context>

<pallas_src>
import jax
import jax.numpy as jnp
from jax.experimental import pallas as pl
from jax.experimental.pallas import tpu as pltpu


def mlp_kernel(x_ref, w1_ref, b1_ref, w2_ref, b2_ref, o_ref, acc_ref):
    k = pl.program_id(1)

    @pl.when(k == 0)
    def _():
        acc_ref[...] = jnp.zeros_like(acc_ref)

    # fc1 chunk: (tm, D_in) @ (D_in, tk) -> (tm, tk), bf16 operands, f32 acc.
    h = jnp.dot(x_ref[...], w1_ref[...], preferred_element_type=jnp.float32)
    h = h + b1_ref[...]                    # fc1 bias: per hidden column (chunk-local)
    h = h * jax.nn.sigmoid(1.702 * h)      # QuickGELU (sigmoid goes to the EUP slot)

    # fc2 chunk: (tm, tk) @ (tk, D_in) -> (tm, D_in), accumulated over k.
    acc_ref[...] += jnp.dot(h.astype(w2_ref.dtype), w2_ref[...],
                            preferred_element_type=jnp.float32)

    @pl.when(k == pl.num_programs(1) - 1)
    def _():
        # fc2 bias added exactly once, at finalize; single lane-dense store.
        o_ref[...] = (acc_ref[...] + b2_ref[...]).astype(o_ref.dtype)


def qwen2_vision_mlp(x, w1, b1, w2, b2, *, tm=256, tk=512,
                     compute_dtype=jnp.bfloat16):
    """x: [S, D_in]; w1: [D_in, D_h]; b1: [D_h]; w2: [D_h, D_in]; b2: [D_in].

    tm: row tile (multiple of 128 recommended; >=256 on v6e/v7x).
    tk: hidden-dimension chunk (multiple of 128).
    """
    S, D_in = x.shape
    D_h = w1.shape[1]
    tm = min(tm, S)
    tk = min(tk, D_h)
    assert S % tm == 0, "seq must be divisible by the row tile"
    assert D_h % tk == 0, "hidden dim must be divisible by the hidden chunk"

    # bf16 operands, f32 biases (biases are added to the f32 accumulators).
    xc = x.astype(compute_dtype)
    w1c = w1.astype(compute_dtype)
    w2c = w2.astype(compute_dtype)
    b1_2d = b1.reshape(1, D_h).astype(jnp.float32)
    b2_2d = b2.reshape(1, D_in).astype(jnp.float32)

    grid = (S // tm, D_h // tk)

    grid_spec = pltpu.PrefetchScalarGridSpec(
        num_scalar_prefetch=0,
        grid=grid,
        in_specs=[
            pl.BlockSpec((tm, D_in), lambda i, k: (i, 0)),   # x row tile (resident over k)
            pl.BlockSpec((D_in, tk), lambda i, k: (0, k)),   # w1 hidden chunk
            pl.BlockSpec((1, tk),    lambda i, k: (0, k)),   # b1 hidden chunk
            pl.BlockSpec((tk, D_in), lambda i, k: (k, 0)),   # w2 hidden chunk
            pl.BlockSpec((1, D_in),  lambda i, k: (0, 0)),   # b2 (used at finalize only)
        ],
        out_specs=pl.BlockSpec((tm, D_in), lambda i, k: (i, 0)),
        scratch_shapes=[pltpu.VMEM((tm, D_in), jnp.float32)],  # fc2 accumulator
    )

    bytes_accessed = (
        xc.size * xc.dtype.itemsize
        + w1c.size * w1c.dtype.itemsize
        + w2c.size * w2c.dtype.itemsize
        + b1_2d.size * 4 + b2_2d.size * 4
        + S * D_in * x.dtype.itemsize
    )
    cost = pl.CostEstimate(
        flops=2 * S * D_in * D_h * 2,      # fc1 + fc2
        transcendentals=S * D_h,           # sigmoid
        bytes_accessed=bytes_accessed,
    )

    return pl.pallas_call(
        mlp_kernel,
        out_shape=jax.ShapeDtypeStruct((S, D_in), x.dtype),
        grid_spec=grid_spec,
        compiler_params=pltpu.CompilerParams(
            dimension_semantics=("parallel", "arbitrary"),
            vmem_limit_bytes=48 * 1024 * 1024,
        ),
        cost_estimate=cost,
    )(xc, w1c, b1_2d, w2c, b2_2d)


def reference_mlp(x, w1, b1, w2, b2):
    """Reference that mirrors the kernel's bf16-operand / f32-accumulate numerics."""
    xf = x.astype(jnp.bfloat16).astype(jnp.float32)
    w1f = w1.astype(jnp.bfloat16).astype(jnp.float32)
    w2f = w2.astype(jnp.bfloat16).astype(jnp.float32)
    h = xf @ w1f + b1.astype(jnp.float32)
    h = h * jax.nn.sigmoid(1.702 * h)
    h = h.astype(jnp.bfloat16).astype(jnp.float32)
    y = h @ w2f + b2.astype(jnp.float32)
    return y.astype(x.dtype)


if __name__ == "__main__":
    # Small but lane-dense / (8,128)-aligned shapes consistent with the module:
    # S tokens, in_features, hidden_features.
    S, D_in, D_h = 256, 256, 512

    key = jax.random.PRNGKey(0)
    kx, kw1, kb1, kw2, kb2 = jax.random.split(key, 5)

    x = jax.random.normal(kx, (S, D_in), dtype=jnp.float32)

    # PyTorch nn.Linear stores weight as (out, in); pre-transpose to (in, out).
    w1_torch = jax.random.normal(kw1, (D_h, D_in), dtype=jnp.float32) * 0.05
    b1 = jax.random.normal(kb1, (D_h,), dtype=jnp.float32) * 0.05
    w2_torch = jax.random.normal(kw2, (D_in, D_h), dtype=jnp.float32) * 0.05
    b2 = jax.random.normal(kb2, (D_in,), dtype=jnp.float32) * 0.05

    w1 = w1_torch.T  # (D_in, D_h)
    w2 = w2_torch.T  # (D_h, D_in)

    # tm=128 / tk=256 so the test exercises both grid axes (row tiles + K-accumulation).
    out = qwen2_vision_mlp(x, w1, b1, w2, b2, tm=128, tk=256)
    out = jax.block_until_ready(out)

    ref = reference_mlp(x, w1, b1, w2, b2)
    assert out.shape == (S, D_in)
    assert jnp.allclose(out.astype(jnp.float32), ref.astype(jnp.float32),
                        atol=2e-2, rtol=2e-2), "mismatch vs reference"

    print("KERNEL_OK")
</pallas_src>

<mosaic_0001>
module attributes {stable_mosaic.version = 11 : i64} {
  func.func @mlp_kernel(%arg0: i32, %arg1: i32, %arg2: memref<128x256xbf16, #tpu.memory_space<vmem>>, %arg3: memref<256x256xbf16, #tpu.memory_space<vmem>>, %arg4: memref<1x256xf32, #tpu.memory_space<vmem>>, %arg5: memref<256x256xbf16, #tpu.memory_space<vmem>>, %arg6: memref<1x256xf32, #tpu.memory_space<vmem>>, %arg7: memref<128x256xf32, #tpu.memory_space<vmem>>, %arg8: memref<128x256xf32, #tpu.memory_space<vmem>>) attributes {dimension_semantics = [#tpu.dimension_semantics<parallel>, #tpu.dimension_semantics<arbitrary>], iteration_bounds = array<i64: 2, 2>, scalar_prefetch = 0 : i64, scratch_operands = 1 : i64, tpu.core_type = #tpu.core_type<tc>, window_params = [{transform_indices = @transform_0, window_bounds = array<i64: 128, 256>}, {transform_indices = @transform_1, window_bounds = array<i64: 256, 256>}, {transform_indices = @transform_2, window_bounds = array<i64: 1, 256>}, {transform_indices = @transform_3, window_bounds = array<i64: 256, 256>}, {pipeline_mode = #tpu.pipeline_mode<synchronous>, transform_indices = @transform_4, window_bounds = array<i64: 1, 256>}, {transform_indices = @transform_5, window_bounds = array<i64: 128, 256>}]} {
    %c0_i32 = arith.constant 0 : i32
    %0 = arith.cmpi eq, %arg1, %c0_i32 : i32
    %1 = arith.extui %0 : i1 to i32
    %c0_i32_0 = arith.constant 0 : i32
    %2 = arith.cmpi ne, %1, %c0_i32_0 : i32
    scf.if %2 {
      %cst_16 = arith.constant 0.000000e+00 : f32
      %26 = vector.broadcast %cst_16 : f32 to vector<128x256xf32>
      %c0_17 = arith.constant 0 : index
      %c0_18 = arith.constant 0 : index
      %27 = vector.load %arg8[%c0_17, %c0_18] : memref<128x256xf32, #tpu.memory_space<vmem>>, vector<128x256xf32>
      tpu.vector_store %arg8[%c0_17, %c0_18], %26 {strides = array<i32>} : memref<128x256xf32, #tpu.memory_space<vmem>>, vector<128x256xf32>,
    } else {
    }
    %c0 = arith.constant 0 : index
    %c0_1 = arith.constant 0 : index
    %3 = vector.load %arg2[%c0, %c0_1] : memref<128x256xbf16, #tpu.memory_space<vmem>>, vector<128x256xbf16>
    %c0_2 = arith.constant 0 : index
    %c0_3 = arith.constant 0 : index
    %4 = vector.load %arg3[%c0_2, %c0_3] : memref<256x256xbf16, #tpu.memory_space<vmem>>, vector<256x256xbf16>
    %cst = arith.constant dense<0.000000e+00> : vector<128x256xf32>
    %5 = tpu.matmul %3, %4, %cst {dimension_numbers = #tpu.dot_dimension_numbers<[1], [0], [0], [1], [0, 0, 1, 1], [], []>} : vector<128x256xbf16>, vector<256x256xbf16>, vector<128x256xf32> -> vector<128x256xf32>
    %c0_4 = arith.constant 0 : index
    %c0_5 = arith.constant 0 : index
    %6 = vector.load %arg4[%c0_4, %c0_5] : memref<1x256xf32, #tpu.memory_space<vmem>>, vector<1x256xf32>
    %7 = vector.broadcast %6 : vector<1x256xf32> to vector<128x256xf32>
    %8 = arith.addf %5, %7 : vector<128x256xf32>
    %cst_6 = arith.constant 1.702000e+00 : f32
    %9 = vector.broadcast %cst_6 : f32 to vector<128x256xf32>
    %10 = arith.mulf %9, %8 : vector<128x256xf32>
    %11 = arith.negf %10 : vector<128x256xf32>
    %12 = math.exp %11 : vector<128x256xf32>
    %cst_7 = arith.constant 1.000000e+00 : f32
    %13 = vector.broadcast %cst_7 : f32 to vector<128x256xf32>
    %14 = arith.addf %13, %12 : vector<128x256xf32>
    %15 = arith.divf %13, %14 : vector<128x256xf32>
    %16 = arith.mulf %8, %15 : vector<128x256xf32>
    %c0_8 = arith.constant 0 : index
    %c0_9 = arith.constant 0 : index
    %17 = vector.load %arg8[%c0_8, %c0_9] : memref<128x256xf32, #tpu.memory_space<vmem>>, vector<128x256xf32>
    %18 = arith.truncf %16 : vector<128x256xf32> to vector<128x256xbf16>
    %c0_10 = arith.constant 0 : index
    %c0_11 = arith.constant 0 : index
    %19 = vector.load %arg5[%c0_10, %c0_11] : memref<256x256xbf16, #tpu.memory_space<vmem>>, vector<256x256xbf16>
    %cst_12 = arith.constant dense<0.000000e+00> : vector<128x256xf32>
    %20 = tpu.matmul %18, %19, %cst_12 {dimension_numbers = #tpu.dot_dimension_numbers<[1], [0], [0], [1], [0, 0, 1, 1], [], []>} : vector<128x256xbf16>, vector<256x256xbf16>, vector<128x256xf32> -> vector<128x256xf32>
    %21 = arith.addf %17, %20 : vector<128x256xf32>
    %c0_13 = arith.constant 0 : index
    %c0_14 = arith.constant 0 : index
    %22 = vector.load %arg8[%c0_13, %c0_14] : memref<128x256xf32, #tpu.memory_space<vmem>>, vector<128x256xf32>
    tpu.vector_store %arg8[%c0_13, %c0_14], %21 {strides = array<i32>} : memref<128x256xf32, #tpu.memory_space<vmem>>, vector<128x256xf32>,
    %c1_i32 = arith.constant 1 : i32
    %23 = arith.cmpi eq, %arg1, %c1_i32 : i32
    %24 = arith.extui %23 : i1 to i32
    %c0_i32_15 = arith.constant 0 : i32
    %25 = arith.cmpi ne, %24, %c0_i32_15 : i32
    scf.if %25 {
      %c0_16 = arith.constant 0 : index
      %c0_17 = arith.constant 0 : index
      %26 = vector.load %arg8[%c0_16, %c0_17] : memref<128x256xf32, #tpu.memory_space<vmem>>, vector<128x256xf32>
      %c0_18 = arith.constant 0 : index
      %c0_19 = arith.constant 0 : index
      %27 = vector.load %arg6[%c0_18, %c0_19] : memref<1x256xf32, #tpu.memory_space<vmem>>, vector<1x256xf32>
      %28 = vector.broadcast %27 : vector<1x256xf32> to vector<128x256xf32>
      %29 = arith.addf %26, %28 : vector<128x256xf32>
      %c0_20 = arith.constant 0 : index
      %c0_21 = arith.constant 0 : index
      %30 = vector.load %arg7[%c0_20, %c0_21] : memref<128x256xf32, #tpu.memory_space<vmem>>, vector<128x256xf32>
      tpu.vector_store %arg7[%c0_20, %c0_21], %29 {strides = array<i32>} : memref<128x256xf32, #tpu.memory_space<vmem>>, vector<128x256xf32>,
    } else {
    }
    return
  }
  func.func @transform_0(%arg0: i32, %arg1: i32) -> (i32, i32) {
    %c0_i32 = arith.constant 0 : i32
    %c0_i32_0 = arith.constant 0 : i32
    return %arg0, %c0_i32 : i32, i32
  }
  func.func @transform_1(%arg0: i32, %arg1: i32) -> (i32, i32) {
    %c0_i32 = arith.constant 0 : i32
    %c0_i32_0 = arith.constant 0 : i32
    return %c0_i32, %arg1 : i32, i32
  }
  func.func @transform_2(%arg0: i32, %arg1: i32) -> (i32, i32) {
    %c0_i32 = arith.constant 0 : i32
    %c0_i32_0 = arith.constant 0 : i32
    return %c0_i32, %arg1 : i32, i32
  }
  func.func @transform_3(%arg0: i32, %arg1: i32) -> (i32, i32) {
    %c0_i32 = arith.constant 0 : i32
    %c0_i32_0 = arith.constant 0 : i32
    return %arg1, %c0_i32 : i32, i32
  }
  func.func @transform_4(%arg0: i32, %arg1: i32) -> (i32, i32) {
    %c0_i32 = arith.constant 0 : i32
    %c0_i32_0 = arith.constant 0 : i32
    %c0_i32_1 = arith.constant 0 : i32
    return %c0_i32, %c0_i32_0 : i32, i32
  }
  func.func @transform_5(%arg0: i32, %arg1: i32) -> (i32, i32) {
    %c0_i32 = arith.constant 0 : i32
    %c0_i32_0 = arith.constant 0 : i32
    return %arg0, %c0_i32 : i32, i32
  }
}

</mosaic_0001>

<bundles_post_ra>
// kernel: tpu_custom_call.1
= control target key start
LH: loop header
LB: loop body
LE: loop exit
PB: predicated region body
PF: predicated region fallthrough
CT: control target
= control target key end

     0   :  { %s3227_s0 = inlined_call_operand.hbm [shape: bf16[256,256], index: 0, kind: input, shape index: {}]   ;;  %s3228_s1 = inlined_call_operand.hbm [shape: bf16[256,512], index: 1, kind: input, shape index: {}]   ;;  %s3229_s2 = inlined_call_operand.hbm [shape: f32[1,512], index: 2, kind: input, shape index: {}]   ;;  %s3230_s3 = inlined_call_operand.hbm [shape: bf16[512,256], index: 3, kind: input, shape index: {}]   ;;  %s3231_s4 = inlined_call_operand.vmem [shape: f32[1,256], index: 4, kind: input, shape index: {}]   ;;  %s3232_s5 = inlined_call_operand.hbm [shape: f32[256,256], index: 5, kind: output, shape index: {}]  }
   0x1   :  { %3250 = sst [smem:[#allocation27_spill]] %s3227_s0 }
   0x2   :  { %3251 = sst [smem:[#allocation28_spill]] %s3228_s1 }
   0x3   :  { %3252 = sst [smem:[#allocation29_spill]] %s3231_s4 }
   0x4   :  { %3253 = sst [smem:[#allocation30_spill]] %s3232_s5 }
   0x5   :  { %10 = vsyncpa [#allocation4], 0 }
   0x6   :  { %12 = vsyncpa [#allocation4 + $0x1], 0 }
   0x7   :  { %13 = vsyncpa [#allocation7], 0 }
   0x8   :  { %15 = vsyncpa [#allocation7 + $0x1], 0 }
   0x9   :  { %16 = vsyncpa [#allocation10], 0 }
   0xa   :  { %18 = vsyncpa [#allocation10 + $0x1], 0 }
   0xb   :  { %19 = vsyncpa [#allocation5], 0 }
   0xc   :  { %21 = vsyncpa [#allocation5 + $0x1], 0  ;;  %s2582_s18 = smov 0   ;;  %s2584_s19 = smov 0  }
   0xd   :  { %s2586_s20 = smov 0   ;;  %s2588_s21 = smov 0  }
   0xe   :  { %s2590_s22 = smov 0   ;;  %s2592_s23 = smov 0  }
   0xf   :  { %s2594_s24 = smov 0   ;;  %s2596_s25 = smov 0  }
  0x10   :  { %s2598_s26 = smov 0   ;;  %s2600_s27 = smov 0  }
  0x11   :  { %s2602_s28 = smov 0  }
  0x12 LB: > { %3254 = sst [smem:[#allocation16_spill]] %s2507_s20  ;;  %p54_p0 = scmp.eq.s32.totalorder %s2539_s28, 0  ;;  %s2539_s28 = sphi %s2602_s28, %s27_s28   ;;  %s2535_s27 = sphi %s2600_s27, %s3294_s27   ;;  %s2531_s26 = sphi %s2598_s26, %s3300_s26   ;;  %s2527_s25 = sphi %s2596_s25, %s3292_s25   ;;  %s2523_s24 = sphi %s2594_s24, %s3299_s24   ;;  %s2519_s23 = sphi %s2592_s23, %s3291_s23   ;;  %s2515_s22 = sphi %s2590_s22, %s3298_s22   ;;  %s2511_s21 = sphi %s2588_s21, %s3297_s21   ;;  %s2507_s20 = sphi %s2586_s20, %s3289_s20   ;;  %s2503_s19 = sphi %s2584_s19, %s3296_s19   ;;  %s2499_s18 = sphi %s2582_s18, %s3295_s18  }
  0x13   : > { %3255 = sst [smem:[#allocation17_spill]] %s2511_s21  ;;  %s72_s29 = sadd.s32 1, %s2507_s20 }
  0x14   : > { %3256 = sst [smem:[#allocation18_spill]] %s2519_s23  ;;  %p79_p1 = scmp.ne.s32.totalorder %s2507_s20, %s2503_s19 }
  0x15   : > { %3257 = sst [smem:[#allocation19_spill]] %s2527_s25  ;;  %p85_p2 = scmp.ne.s32.totalorder %s2503_s19, %s2499_s18 }
  0x16   : > { %3258 = sst [smem:[#allocation20_spill]] %s2535_s27  ;;  %p3240_p3 = scmp.lt.s32.totalorder %s2539_s28, 4 }
  0x17   : > { %3259 = sst [smem:[#allocation21_spill]] %s2539_s28  ;;  %p81_p4 = por %p79_p1, %p54_p0 }
  0x18   : > { %s233_s30 = sand.u32 1, %s2539_s28   ;;  %s2648_s6 = sand.u32 1, %s2507_s20  }
  0x19   : > { %s3233_s7 = sshll.u32 %s2648_s6, 8  ;;  %s1922_s8 = sshll.u32 %s2531_s26, 7 }
  0x1a   : > { %s3260_s1 = sld [smem:[#allocation28_spill]]  ;;  %s237_s12 = scalar_lea.vmem [#allocation6], %s3233_s7 }
  0x1b   : > { %s244_s13 = sshll.u32 %s237_s12, 4  ;;  %p2659_p5 = pnand %p3240_p3, %p81_p4  ;;  %s245_s13 = int_to_ptr.vmem [resolvable:$true] %s244_s13 }
  0x1c   : > { %p1794_p6 = scmp.ge.s32.totalorder %s2539_s28, 1  ;;  %s2664_s15 = scalar_lea.sflag [#allocation7], %s233_s30 }
  0x1d   : > { %p3239_p7 = pneg %p2659_p5  ;;  %s2312_s16 = scalar_lea.vmem %s245_s13, 4096 }
  0x1e   : > { %p2313_p8 = scmp.ne.s32.totalorder %s245_s13, %s2312_s16  ;;  %s2541_s17 = smov [#allocation6]  }
  0x20   : > { %s243_s11 = scalar_lea.hbm %s3260_s1, %s1922_s8  ;;  %p2315_p9 = pnand %p2313_p8, %p3239_p7 }
  0x21   : > { %s2317_s8 = sshll.u32 %s2541_s17, 4  ;;  %s2318_s8 = int_to_ptr.vmem [resolvable:$false] %s2317_s8 }
  0x22   : > { %p2316_p10 = pneg %p2315_p9  ;;  %s2319_s9 = scalar_lea.vmem %s2318_s8, 8192 }
  0x23   : > { %p2320_p11 = scmp.lt.s32.totalorder %s245_s13, %s2318_s8  ;;  %p2321_p12 = scmp.lt.s32.totalorder %s2319_s9, %s2312_s16 }
  0x25   : > { %p2322_p13 = por %p2321_p12, %p2320_p11 }
  0x27   : > { %p2323_p1 = pnand %p2322_p13, %p2316_p10 }
  0x29   : > { %2326 = shalt.err (!%p2323_p1)
}
  0x2a   : > { %s2542_s10 = smov 256   ;;  %s3234_s30 = smov 128  }
  0x2b   : > { %s3236_s12 = smov 8   ;;  %p293_p4 = scmp.lt.s32.totalorder %s2539_s28, 5 }
  0x2c   : > { %1944 = dma.hbm_to_vmem [thread:$0]  (!%p2659_p5), %s243_s11, 4096, %s245_s13, %s2664_s15, %s2542_s10, %s3234_s30, %s3236_s12  }
  0x2d   : > { %p2679_p8 = pnand %p1794_p6, %p293_p4  ;;  %s2684_s17 = sadd.s32 4294967295, %s2539_s28  }
  0x2e   : > { %s1777_s8 = sadd.s32 4294967294, %s2539_s28   ;;  %s36_s9 = sadd.s32 1, %s2531_s26 }
  0x2f   : > { %s39_s7 = sadd.s32 1, %s2535_s27  ;;  %p37_p9 = scmp.ge.s32.totalorder %s36_s9, 2 }
  0x30   : > { %s46_s11 = sadd.s32 1, %s2519_s23  ;;  %p53_p10 = scmp.ne.s32.totalorder %s2519_s23, %s2515_s22 }
  0x31   : > { %p59_p11 = scmp.ne.s32.totalorder %s2515_s22, %s2511_s21  ;;  %s3302_s9 = smov (%p37_p9, %s36_s9), 0 }
  0x32   : > { %3263 = sst [smem:[#allocation22_spill]] %s3302_s9  ;;  %s3304_s7 = smov (!%p37_p9, %s39_s7), %s2535_s27 }
  0x33   : > { %p2702_p6 = por %p54_p0, %p53_p10  ;;  %p60_p12 = scmp.eq.s32.totalorder %s2684_s17, 0 }
  0x34   : > { %p41_p13 = scmp.ge.s32.totalorder %s3304_s7, 2  ;;  %s69_s10 = ssub.s32 %s2531_s26, %s3302_s9 }
  0x35   : > { %p2712_p1 = por %p60_p12, %p59_p11  ;;  %p70_p4 = scmp.eq.s32.totalorder %s69_s10, 0 }
  0x36   : > { %s3306_s7 = smov (%p41_p13, %s3304_s7), 0  ;;  %p2728_p0 = por %p85_p2, %p60_p12 }
  0x37   : > { %3266 = sst [smem:[#allocation23_spill]] %s3306_s7  ;;  %s43_s1 = ssub.s32 %s2535_s27, %s3306_s7 }
  0x38   : > { %s2721_s12 = scalar_select %p70_p4, %s2507_s20, %s72_s29  }
  0x39   : > { %p44_p9 = scmp.eq.s32.totalorder %s43_s1, 0  ;;  %p182_p7 = scmp.eq.s32.totalorder %s2684_s17, 3 }
  0x3a   : > { %3267 = sst [smem:[#allocation24_spill]] %s2721_s12  ;;  %p188_p3 = scmp.eq.s32.totalorder %s1777_s8, 3 }
  0x3b   : > { %s211_s10 = sand.u32 1, %s2519_s23   ;;  %p2740_p13 = por %p182_p7, %p53_p10 }
  0x3c   : > { %s2735_s9 = scalar_select %p44_p9, %s2519_s23, %s46_s11  }
  0x3d   : > { %p2747_p4 = por %p188_p3, %p59_p11  ;;  %s1780_s7 = sshll.u32 %s211_s10, 7 }
  0x3e   : > { %3269 = sst [smem:[#allocation25_spill]] %s2735_s9  ;;  %s1921_s12 = sshll.u32 %s2535_s27, 11 }
  0x3f   : > { %s3271_s18 = scalar_select %p2747_p4, 1, 0 }
  0x40   : > { %s3273_s0 = sld [smem:[#allocation27_spill]]  ;;  %s215_s8 = scalar_lea.vmem [#allocation3], %s1780_s7 }
  0x41   : > { %3272 = sst [smem:[#allocation26_spill]] %s3271_s18  ;;  %s223_s4 = sshll.u32 %s215_s8, 4  ;;  %s224_s4 = int_to_ptr.vmem [resolvable:$true] %s223_s4 }
  0x42   : > { %p3274_p2 = scmp.lt.s32.totalorder %s2539_s28, 4  ;;  %s1787_s9 = sshll.u32 %s2648_s6, 1 }
  0x43   : > { %s1923_s23 = sshll.u32 %s2531_s26, 5  ;;  %s212_s21 = scalar_lea.sflag [#allocation4], %s211_s10 }
  0x44   : > { %p2759_p7 = pnand %p3274_p2, %p2702_p6  ;;  %s2340_s27 = scalar_lea.vmem %s224_s4, 2048 }
  0x45   : > { %p2341_p10 = scmp.ne.s32.totalorder %s224_s4, %s2340_s27  ;;  %s2545_s20 = smov [#allocation3]  }
  0x46   : > { %s222_s1 = scalar_lea.hbm %s3273_s0, %s1921_s12  ;;  %p2329_p3 = pneg %p2759_p7 }
  0x47   : > { %s2345_s25 = sshll.u32 %s2545_s20, 4  ;;  %s2346_s25 = int_to_ptr.vmem [resolvable:$false] %s2345_s25 }
  0x48   : > { %p2343_p11 = pnand %p2341_p10, %p2329_p3  ;;  %s2347_s7 = scalar_lea.vmem %s2346_s25, 4096 }
  0x49   : > { %p2348_p9 = scmp.lt.s32.totalorder %s224_s4, %s2346_s25  ;;  %p2349_p4 = scmp.lt.s32.totalorder %s2347_s7, %s2340_s27 }
  0x4a   : > { %p2344_p12 = pneg %p2343_p11 }
  0x4b   : > { %p2350_p6 = por %p2349_p4, %p2348_p9 }
  0x4d   : > { %p2351_p2 = pnand %p2350_p6, %p2344_p12 }
  0x4f   : > { %2354 = shalt.err (!%p2351_p2)
}
  0x50   : > { %s3276_s12 = smov 8   ;;  %s3277_s13 = smov 128  }
  0x51   : > { %1941 = dma.hbm_to_vmem [thread:$0]  (!%p2759_p7), %s222_s1, 2048, %s224_s4, %s212_s21, %s3277_s13, %s3277_s13, %s3276_s12  }
  0x52   : > { %s264_s0 = scalar_lea.hbm %s3229_s2, %s1923_s23  ;;  %s258_s18 = scalar_lea.vmem [#allocation8], %s1787_s9 }
  0x53   : > { %s266_s20 = sshll.u32 %s258_s18, 4  ;;  %p3278_p4 = pneg %p2659_p5  ;;  %s267_s20 = int_to_ptr.vmem [resolvable:$true] %s266_s20 }
  0x54   : > { %s2368_s28 = scalar_lea.vmem %s267_s20, 32  ;;  %s2546_s27 = smov [#allocation8]  }
  0x55   : > { %p2369_p3 = scmp.ne.s32.totalorder %s267_s20, %s2368_s28  ;;  %s2373_s11 = sshll.u32 %s2546_s27, 4  ;;  %s2374_s11 = int_to_ptr.vmem [resolvable:$false] %s2373_s11 }
  0x56   : > { %s2375_s25 = scalar_lea.vmem %s2374_s11, 64  ;;  %p2376_p12 = scmp.lt.s32.totalorder %s267_s20, %s2374_s11 }
  0x57   : > { %p2371_p10 = pnand %p2369_p3, %p3278_p4  ;;  %p2377_p9 = scmp.lt.s32.totalorder %s2375_s25, %s2368_s28 }
  0x59   : > { %p2372_p11 = pneg %p2371_p10  ;;  %p2378_p7 = por %p2377_p9, %p2376_p12 }
  0x5b   : > { %p2379_p6 = pnand %p2378_p7, %p2372_p11 }
  0x5d   : > { %2382 = shalt.err (!%p2379_p6)
}
  0x5e   : > { %1947 = dma.hbm_to_vmem [thread:$0]  (!%p2659_p5), %s264_s0, 32, %s267_s20, %s2664_s15  }
  0x5f   : > { %s1925_s4 = sshll.u32 %s2531_s26, 12  ;;  %s3279_s18 = sshll.u32 %s2648_s6, 8 }
  0x60   : > { %s284_s9 = scalar_lea.hbm %s3230_s3, %s1925_s4  ;;  %s277_s1 = scalar_lea.vmem [#allocation9], %s3279_s18 }
  0x61   : > { %s285_s7 = sshll.u32 %s277_s1, 4  ;;  %s274_s28 = scalar_lea.sflag [#allocation10], %s2648_s6  ;;  %s286_s7 = int_to_ptr.vmem [resolvable:$true] %s285_s7 }
  0x62   : > { %s2396_s10 = scalar_lea.vmem %s286_s7, 4096  ;;  %p3280_p3 = pmov %p3278_p4 }
  0x63   : > { %p2397_p2 = scmp.ne.s32.totalorder %s286_s7, %s2396_s10  ;;  %s2547_s8 = smov [#allocation9]  }
  0x64   : > { %s2401_s27 = sshll.u32 %s2547_s8, 4  ;;  %s2402_s27 = int_to_ptr.vmem [resolvable:$false] %s2401_s27 }
  0x65   : > { %p2399_p4 = pnand %p2397_p2, %p3280_p3  ;;  %s2403_s0 = scalar_lea.vmem %s2402_s27, 8192 }
  0x66   : > { %p2404_p11 = scmp.lt.s32.totalorder %s286_s7, %s2402_s27  ;;  %p2405_p12 = scmp.lt.s32.totalorder %s2403_s0, %s2396_s10 }
  0x67   : > { %p2400_p10 = pneg %p2399_p4 }
  0x68   : > { %p2406_p9 = por %p2405_p12, %p2404_p11 }
  0x6a   : > { %p2407_p7 = pnand %p2406_p9, %p2400_p10 }
  0x6c   : > { %2410 = shalt.err (!%p2407_p7)
}
  0x6d   : > { %1950 = dma.hbm_to_vmem [thread:$0]  (!%p2659_p5), %s284_s9, 4096, %s286_s7, %s274_s28, %s3277_s13, %s3277_s13, %s3276_s12  }
  0x6e   : > { %297 = sbr.rel (%p2679_p8) target bundleno = 758 (0x2f6), region = 40  ;;  %s2799_s6 = sand.u32 (!%p2679_p8), 1, %s2515_s22  }
  0x6f   : > { %s1795_s15 = sshll.u32 (!%p2679_p8), %s2799_s6, 7  ;;  %s300_s20 = scalar_lea.sflag (!%p2679_p8), [#allocation4], %s2799_s6 }
  0x70   : > { %s2803_s11 = scalar_lea.vmem (!%p2679_p8), [#allocation3], %s1795_s15 }
  0x73   : > { %2482 = dma.done.wait (%p2712_p1), %s300_s20, 2048  }
  0x74   : > { %2484 = vsyncadd (%p2712_p1), %s300_s20, 4294965248  ;;  %s308_s14 = sand.u32 1, %s2684_s17   ;;  %s310_s16 = sand.u32 1, %s2503_s19  }
  0x75   : > { %s1796_s12 = sshll.u32 %s310_s16, 8  ;;  %s309_s13 = scalar_lea.sflag [#allocation7], %s308_s14 }
  0x76   : > { %s2811_s25 = scalar_lea.vmem [#allocation6], %s1796_s12 }
  0x77   : > { %2486 = dma.done.wait (%p2728_p0), %s309_s13, 4128  }
  0x78   : > { %2488 = vsyncadd (%p2728_p0), %s309_s13, 4294963168  ;;  %s1797_s4 = sshll.u32 %s310_s16, 1  ;;  %s327_s30 = scalar_lea.sflag [#allocation10], %s310_s16 }
  0x79   : > { %s2817_s21 = scalar_lea.vmem [#allocation8], %s1797_s4  ;;  %s2819_s23 = scalar_lea.vmem [#allocation9], %s1796_s12 }
  0x7a   : > { %2490 = dma.done.wait (%p2728_p0), %s327_s30, 4096  }
  0x7b   : > { %2492 = vsyncadd (%p2728_p0), %s327_s30, 4294963200  ;;  %s1799_s17 = sshll.u32 %s2799_s6, 8  ;;  %p1800_p5 = scmp.ne.s32.totalorder %s2523_s24, 0 }
  0x7c   : > { %s2826_s9 = scalar_lea.vmem [#allocation11], %s1799_s17 }
  0x7d   : > { %380 = sbr.rel (%p1800_p5) target bundleno = 147 (0x93), region = 60 }
  0x82   : > { %v2548_v0 = vmov 0.0  }
  0x83   : > { %381 = vst [vmem:[#allocation2 + $0xb0] sm:$0xff] %v2548_v0  ;;  %382 = vst [vmem:[#allocation2] sm:$0xff] %v2548_v0 }
  0x84   : > { %383 = vst [vmem:[#allocation2 + $0xd8] sm:$0xff] %v2548_v0  ;;  %384 = vst [vmem:[#allocation2 + $0x18] sm:$0xff] %v2548_v0 }
  0x85   : > { %385 = vst [vmem:[#allocation2 + $0x50] sm:$0xff] %v2548_v0  ;;  %386 = vst [vmem:[#allocation2 + $0x68] sm:$0xff] %v2548_v0 }
  0x86   : > { %387 = vst [vmem:[#allocation2 + $0x30] sm:$0xff] %v2548_v0  ;;  %388 = vst [vmem:[#allocation2 + $0x48] sm:$0xff] %v2548_v0 }
  0x87   : > { %389 = vst [vmem:[#allocation2 + $0x80] sm:$0xff] %v2548_v0  ;;  %390 = vst [vmem:[#allocation2 + $0x88] sm:$0xff] %v2548_v0 }
  0x88   : > { %391 = vst [vmem:[#allocation2 + $0xe8] sm:$0xff] %v2548_v0  ;;  %392 = vst [vmem:[#allocation2 + $0xb8] sm:$0xff] %v2548_v0 }
  0x89   : > { %393 = vst [vmem:[#allocation2 + $0x60] sm:$0xff] %v2548_v0  ;;  %394 = vst [vmem:[#allocation2 + $0xf0] sm:$0xff] %v2548_v0 }
  0x8a   : > { %395 = vst [vmem:[#allocation2 + $0x8] sm:$0xff] %v2548_v0  ;;  %396 = vst [vmem:[#allocation2 + $0x78] sm:$0xff] %v2548_v0 }
  0x8b   : > { %397 = vst [vmem:[#allocation2 + $0x38] sm:$0xff] %v2548_v0  ;;  %398 = vst [vmem:[#allocation2 + $0x58] sm:$0xff] %v2548_v0 }
  0x8c   : > { %399 = vst [vmem:[#allocation2 + $0x40] sm:$0xff] %v2548_v0  ;;  %400 = vst [vmem:[#allocation2 + $0xc8] sm:$0xff] %v2548_v0 }
  0x8d   : > { %401 = vst [vmem:[#allocation2 + $0xe0] sm:$0xff] %v2548_v0  ;;  %402 = vst [vmem:[#allocation2 + $0x90] sm:$0xff] %v2548_v0 }
  0x8e   : > { %403 = vst [vmem:[#allocation2 + $0x70] sm:$0xff] %v2548_v0  ;;  %404 = vst [vmem:[#allocation2 + $0xc0] sm:$0xff] %v2548_v0 }
  0x8f   : > { %405 = vst [vmem:[#allocation2 + $0xa8] sm:$0xff] %v2548_v0  ;;  %406 = vst [vmem:[#allocation2 + $0xd0] sm:$0xff] %v2548_v0 }
  0x90   : > { %407 = vst [vmem:[#allocation2 + $0x10] sm:$0xff] %v2548_v0  ;;  %408 = vst [vmem:[#allocation2 + $0x28] sm:$0xff] %v2548_v0 }
  0x91   : > { %409 = vst [vmem:[#allocation2 + $0xa0] sm:$0xff] %v2548_v0  ;;  %410 = vst [vmem:[#allocation2 + $0xf8] sm:$0xff] %v2548_v0 }
  0x92   : > { %411 = vst [vmem:[#allocation2 + $0x20] sm:$0xff] %v2548_v0  ;;  %412 = vst [vmem:[#allocation2 + $0x98] sm:$0xff] %v2548_v0 }
  0x93 PF: > { %v2051_v1 = vld [vmem:[%s2811_s25 + $0x74] ss:$8 sps:$4 sm:$0xff]   ;;  %v2053_v2 = vld [vmem:[%s2811_s25 + $0x70] ss:$8 sps:$4 sm:$0xff]   ;;  %v2054_v3 = vld [vmem:[%s2811_s25 + $0x64] ss:$8 sps:$4 sm:$0xff]  }
  0x94   : > { %713 = vmatprep.subr.bf16.mxu0 %v2051_v1  ;;  %v2056_v4 = vld [vmem:[%s2811_s25 + $0x60] ss:$8 sps:$4 sm:$0xff]   ;;  %v2057_v5 = vld [vmem:[%s2811_s25 + $0x54] ss:$8 sps:$4 sm:$0xff]   ;;  %v2059_v6 = vld [vmem:[%s2811_s25 + $0x50] ss:$8 sps:$4 sm:$0xff]  }
  0x95   : > { %714 = vmatpush1.bf16.msra.mxu0 %v2053_v2  ;;  %v2060_v7 = vld [vmem:[%s2811_s25 + $0x44] ss:$8 sps:$4 sm:$0xff]   ;;  %v2062_v8 = vld [vmem:[%s2811_s25 + $0x40] ss:$8 sps:$4 sm:$0xff]   ;;  %v2063_v9 = vld [vmem:[%s2811_s25 + $0x34] ss:$8 sps:$4 sm:$0xff]  }
  0x96   : > { %715 = vmatprep.subr.bf16.mxu0 %v2054_v3  ;;  %v2065_v10 = vld [vmem:[%s2811_s25 + $0x30] ss:$8 sps:$4 sm:$0xff]   ;;  %v2066_v11 = vld [vmem:[%s2811_s25 + $0x24] ss:$8 sps:$4 sm:$0xff]   ;;  %v2068_v12 = vld [vmem:[%s2811_s25 + $0x20] ss:$8 sps:$4 sm:$0xff]  }
  0x97   : > { %v2069_v13 = vld [vmem:[%s2811_s25 + $0x14] ss:$8 sps:$4 sm:$0xff]   ;;  %v2101_v14 = vld [vmem:[%s2803_s11 + $0x4] ss:$8 sps:$4 sm:$0xff]   ;;  %v2071_v15 = vld [vmem:[%s2811_s25 + $0x10] ss:$8 sps:$4 sm:$0xff]  }
  0x98   : > { %v2072_v16 = vld [vmem:[%s2811_s25 + $0x4] ss:$8 sps:$4 sm:$0xff]   ;;  %745 = vmatprep.mubr.bf16.mxu0 %v2101_v14  ;;  %v2074_v17 = vld [vmem:[%s2811_s25] ss:$8 sps:$4 sm:$0xff]   ;;  %v2075_v18 = vld [vmem:[%s2811_s25 + $0xf4] ss:$8 sps:$4 sm:$0xff]  }
  0x99   : > { %716 = vmatpush1.bf16.msra.mxu0 %v2056_v4  ;;  %v2077_v19 = vld [vmem:[%s2811_s25 + $0xf0] ss:$8 sps:$4 sm:$0xff]   ;;  %v2078_v20 = vld [vmem:[%s2811_s25 + $0xe4] ss:$8 sps:$4 sm:$0xff]   ;;  %v2125_v22 = vld [vmem:[%s2819_s23 + $0x70] ss:$8 sps:$4 sm:$0xff]  }
  0x9a   : > { %717 = vmatprep.subr.bf16.mxu0 %v2057_v5  ;;  %v2123_v21 = vld [vmem:[%s2819_s23 + $0x74] ss:$8 sps:$4 sm:$0xff]   ;;  %v2126_v24 = vld [vmem:[%s2819_s23 + $0x64] ss:$8 sps:$4 sm:$0xff]   ;;  %v2081_v25 = vld [vmem:[%s2811_s25 + $0xd4] ss:$8 sps:$4 sm:$0xff]  }
  0x9b   : > { %v2080_v23 = vld [vmem:[%s2811_s25 + $0xe0] ss:$8 sps:$4 sm:$0xff]   ;;  %1322 = vmatprep.subr.bf16.mxu1 %v2123_v21  ;;  %v2128_v26 = vld [vmem:[%s2819_s23 + $0x60] ss:$8 sps:$4 sm:$0xff]   ;;  %v2083_v28 = vld [vmem:[%s2811_s25 + $0xd0] ss:$8 sps:$4 sm:$0xff]  }
  0x9c   : > { %1323 = vmatpush1.bf16.msra.mxu1 %v2125_v22  ;;  %v2129_v27 = vld [vmem:[%s2819_s23 + $0x54] ss:$8 sps:$4 sm:$0xff]   ;;  %v2131_v29 = vld [vmem:[%s2819_s23 + $0x50] ss:$8 sps:$4 sm:$0xff]   ;;  %v2084_v30 = vld [vmem:[%s2811_s25 + $0xc4] ss:$8 sps:$4 sm:$0xff]  }
  0x9d   : > { %718 = vmatpush1.bf16.msra.mxu0 %v2059_v6  ;;  %1324 = vmatprep.subr.bf16.mxu1 %v2126_v24  ;;  %v2132_v31 = vld [vmem:[%s2819_s23 + $0x44] ss:$8 sps:$4 sm:$0xff]   ;;  %v2134_v33 = vld [vmem:[%s2819_s23 + $0x40] ss:$8 sps:$4 sm:$0xff]   ;;  %v2087_v34 = vld [vmem:[%s2811_s25 + $0xb4] ss:$8 sps:$4 sm:$0xff]  }
  0x9e   : > { %719 = vmatprep.subr.bf16.mxu0 %v2060_v7  ;;  %v2086_v32 = vld [vmem:[%s2811_s25 + $0xc0] ss:$8 sps:$4 sm:$0xff]   ;;  %v2089_v35 = vld [vmem:[%s2811_s25 + $0xb0] ss:$8 sps:$4 sm:$0xff]   ;;  %v2090_v36 = vld [vmem:[%s2811_s25 + $0xa4] ss:$8 sps:$4 sm:$0xff]  }
  0x9f   : > { %v2092_v37 = vld [vmem:[%s2811_s25 + $0xa0] ss:$8 sps:$4 sm:$0xff]   ;;  %v2093_v38 = vld [vmem:[%s2811_s25 + $0x94] ss:$8 sps:$4 sm:$0xff]   ;;  %v2095_v39 = vld [vmem:[%s2811_s25 + $0x90] ss:$8 sps:$4 sm:$0xff]  }
  0xa0   : > { %1325 = vmatpush1.bf16.msra.mxu1 %v2128_v26  ;;  %v2096_v40 = vld [vmem:[%s2811_s25 + $0x84] ss:$8 sps:$4 sm:$0xff]   ;;  %v2098_v41 = vld [vmem:[%s2811_s25 + $0x80] ss:$8 sps:$4 sm:$0xff]   ;;  %v2102_v43 = vld [vmem:[%s2803_s11 + $0x14] ss:$8 sps:$4 sm:$0xff]  }
  0xa1   : > { %720 = vmatpush1.bf16.msra.mxu0 %v2062_v8  ;;  %1326 = vmatprep.subr.bf16.mxu1 %v2129_v27  ;;  %v2099_v42 = vld [vmem:[%s2803_s11] ss:$8 sps:$4 sm:$0xff]   ;;  %v2104_v44 = vld [vmem:[%s2803_s11 + $0x10] ss:$8 sps:$4 sm:$0xff]   ;;  %v2105_v45 = vld [vmem:[%s2803_s11 + $0x24] ss:$8 sps:$4 sm:$0xff]  }
  0xa2   : > { %721 = vmatprep.subr.bf16.mxu0 %v2063_v9  ;;  %v2107_v46 = vld [vmem:[%s2803_s11 + $0x20] ss:$8 sps:$4 sm:$0xff]   ;;  %v2108_v47 = vld [vmem:[%s2803_s11 + $0x34] ss:$8 sps:$4 sm:$0xff]   ;;  %v2110_v48 = vld [vmem:[%s2803_s11 + $0x30] ss:$8 sps:$4 sm:$0xff]  }
  0xa3   : > { %v2111_v49 = vld [vmem:[%s2803_s11 + $0x44] ss:$8 sps:$4 sm:$0xff]   ;;  %v2113_v50 = vld [vmem:[%s2803_s11 + $0x40] ss:$8 sps:$4 sm:$0xff]   ;;  %v2114_v51 = vld [vmem:[%s2803_s11 + $0x54] ss:$8 sps:$4 sm:$0xff]  }
  0xa4   : > { %1327 = vmatpush1.bf16.msra.mxu1 %v2131_v29  ;;  %v2116_v52 = vld [vmem:[%s2803_s11 + $0x50] ss:$8 sps:$4 sm:$0xff]   ;;  %v2117_v53 = vld [vmem:[%s2803_s11 + $0x64] ss:$8 sps:$4 sm:$0xff]   ;;  %v2119_v54 = vld [vmem:[%s2803_s11 + $0x60] ss:$8 sps:$4 sm:$0xff]  }
  0xa5   : > { %722 = vmatpush1.bf16.msra.mxu0 %v2065_v10  ;;  %1328 = vmatprep.subr.bf16.mxu1 %v2132_v31  ;;  %v2120_v55 = vld [vmem:[%s2803_s11 + $0x74] ss:$8 sps:$4 sm:$0xff]   ;;  %v2122_v56 = vld [vmem:[%s2803_s11 + $0x70] ss:$8 sps:$4 sm:$0xff]   ;;  %v2140_v60 = vld [vmem:[%s2819_s23 + $0x20] ss:$8 sps:$4 sm:$0xff]  }
  0xa6   : > { %723 = vmatprep.subr.bf16.mxu0 %v2066_v11  ;;  %v2135_v57 = vld [vmem:[%s2819_s23 + $0x34] ss:$8 sps:$4 sm:$0xff]   ;;  %v2137_v58 = vld [vmem:[%s2819_s23 + $0x30] ss:$8 sps:$4 sm:$0xff]   ;;  %v2138_v59 = vld [vmem:[%s2819_s23 + $0x24] ss:$8 sps:$4 sm:$0xff]  }
  0xa7   : > { %v2141_v61 = vld [vmem:[%s2819_s23 + $0x14] ss:$8 sps:$4 sm:$0xff]   ;;  %v2143_v62 = vld [vmem:[%s2819_s23 + $0x10] ss:$8 sps:$4 sm:$0xff]   ;;  %v2144_v63 = vld [vmem:[%s2819_s23 + $0x4] ss:$8 sps:$4 sm:$0xff]  }
  0xa8   : > { %1329 = vmatpush1.bf16.msra.mxu1 %v2134_v33  ;;  %v2146_v0 = vld [vmem:[%s2819_s23] ss:$8 sps:$4 sm:$0xff]   ;;  %v2147_v1 = vld [vmem:[%s2819_s23 + $0xf4] ss:$8 sps:$4 sm:$0xff]   ;;  %v2149_v2 = vld [vmem:[%s2819_s23 + $0xf0] ss:$8 sps:$4 sm:$0xff]  }
  0xa9   : > { %724 = vmatpush1.bf16.msra.mxu0 %v2068_v12  ;;  %1330 = vmatprep.subr.bf16.mxu1 %v2135_v57  ;;  %v2150_v3 = vld [vmem:[%s2819_s23 + $0xe4] ss:$8 sps:$4 sm:$0xff]   ;;  %v2152_v4 = vld [vmem:[%s2819_s23 + $0xe0] ss:$8 sps:$4 sm:$0xff]   ;;  %v2153_v5 = vld [vmem:[%s2819_s23 + $0xd4] ss:$8 sps:$4 sm:$0xff]  }
  0xaa   : > { %725 = vmatprep.subr.bf16.mxu0 %v2069_v13  ;;  %v2155_v6 = vld [vmem:[%s2819_s23 + $0xd0] ss:$8 sps:$4 sm:$0xff]   ;;  %v2156_v7 = vld [vmem:[%s2819_s23 + $0xc4] ss:$8 sps:$4 sm:$0xff]   ;;  %v2158_v8 = vld [vmem:[%s2819_s23 + $0xc0] ss:$8 sps:$4 sm:$0xff]  }
  0xab   : > { %v2159_v9 = vld [vmem:[%s2819_s23 + $0xb4] ss:$8 sps:$4 sm:$0xff]   ;;  %v2161_v10 = vld [vmem:[%s2819_s23 + $0xb0] ss:$8 sps:$4 sm:$0xff]   ;;  %v2162_v11 = vld [vmem:[%s2819_s23 + $0xa4] ss:$8 sps:$4 sm:$0xff]  }
  0xac   : > { %1331 = vmatpush1.bf16.msra.mxu1 %v2137_v58  ;;  %v2164_v12 = vld [vmem:[%s2819_s23 + $0xa0] ss:$8 sps:$4 sm:$0xff]   ;;  %v2165_v13 = vld [vmem:[%s2819_s23 + $0x94] ss:$8 sps:$4 sm:$0xff]   ;;  %v2167_v14 = vld [vmem:[%s2819_s23 + $0x90] ss:$8 sps:$4 sm:$0xff]  }
  0xad   : > { %726 = vmatpush1.bf16.msra.mxu0 %v2071_v15  ;;  %1332 = vmatprep.subr.bf16.mxu1 %v2138_v59  ;;  %v2168_v15 = vld [vmem:[%s2819_s23 + $0x84] ss:$8 sps:$4 sm:$0xff]   ;;  %p1913_p8 = scmp.ne.s32.totalorder %s2523_s24, 1 }
  0xae   : > { %727 = vmatprep.subr.bf16.mxu0 %v2072_v16  ;;  %v2170_v16 = vld [vmem:[%s2819_s23 + $0x80] ss:$8 sps:$4 sm:$0xff]   ;;  %s3281_s1 = sld [smem:[#allocation29_spill]] (!%p1913_p8) }
  0xb0   : > { %1333 = vmatpush1.bf16.msra.mxu1 %v2140_v60 }
  0xb1   : > { %728 = vmatpush1.bf16.msra.mxu0 %v2074_v17  ;;  %1334 = vmatprep.subr.bf16.mxu1 %v2141_v61  ;;  %v463_v17 = vlaneseq }
  0xb2   : > { %729 = vmatprep.subr.bf16.mxu0 %v2075_v18 }
  0xb3   : > { %v2909_v18 = vshrl.u32 %v463_v17, 7 }
  0xb4   : > { %1335 = vmatpush1.bf16.msra.mxu1 %v2143_v62 }
  0xb5   : > { %730 = vmatpush2.bf16.msra.mxu0 %v2077_v19  ;;  %1336 = vmatprep.subr.bf16.mxu1 %v2144_v63  ;;  %v465_v19 = vsub.s32 0, %v2909_v18  ;;  %v469_v21 = vsub.s32 1, %v2909_v18 }
  0xb6   : > { %731 = vmatprep.subr.bf16.mxu0 %v2078_v20  ;;  %v461_v20 = vld [vmem:[%s2817_s21] sm:$0x3] }
  0xb7   : > { %v2916_v22 = vrot.slane %v461_v20, %v465_v19 }
  0xb8   : > { %1337 = vmatpush1.bf16.msra.mxu1 %v2146_v0 }
  0xb9   : > { %732 = vmatpush2.bf16.msra.mxu0 %v2080_v23  ;;  %1338 = vmatprep.subr.bf16.mxu1 %v2147_v1  ;;  %v2920_v23 = vrot.slane %v461_v20, %v469_v21 }
  0xba   : > { %733 = vmatprep.subr.bf16.mxu0 %v2081_v25 }
  0xbc   : > { %1339 = vmatpush2.bf16.msra.mxu1 %v2149_v2 }
  0xbd   : > { %734 = vmatpush2.bf16.msra.mxu0 %v2083_v28  ;;  %1340 = vmatprep.subr.bf16.mxu1 %v2150_v3 }
  0xbe   : > { %735 = vmatprep.subr.bf16.mxu0 %v2084_v30 }
  0xc0   : > { %1341 = vmatpush2.bf16.msra.mxu1 %v2152_v4 }
  0xc1   : > { %736 = vmatpush2.bf16.msra.mxu0 %v2086_v32  ;;  %1342 = vmatprep.subr.bf16.mxu1 %v2153_v5 }
  0xc2   : > { %737 = vmatprep.subr.bf16.mxu0 %v2087_v34 }
  0xc4   : > { %1343 = vmatpush2.bf16.msra.mxu1 %v2155_v6 }
  0xc5   : > { %738 = vmatpush2.bf16.msra.mxu0 %v2089_v35  ;;  %1344 = vmatprep.subr.bf16.mxu1 %v2156_v7 }
  0xc6   : > { %739 = vmatprep.subr.bf16.mxu0 %v2090_v36 }
  0xc8   : > { %1345 = vmatpush2.bf16.msra.mxu1 %v2158_v8 }
  0xc9   : > { %740 = vmatpush2.bf16.msra.mxu0 %v2092_v37  ;;  %1346 = vmatprep.subr.bf16.mxu1 %v2159_v9 }
  0xca   : > { %741 = vmatprep.subr.bf16.mxu0 %v2093_v38 }
  0xcc   : > { %1347 = vmatpush2.bf16.msra.mxu1 %v2161_v10 }
  0xcd   : > { %742 = vmatpush2.bf16.msra.mxu0 %v2095_v39  ;;  %1348 = vmatprep.subr.bf16.mxu1 %v2162_v11 }
  0xce   : > { %743 = vmatprep.subr.bf16.mxu0 %v2096_v40 }
  0xd0   : > { %1349 = vmatpush2.bf16.msra.mxu1 %v2164_v12 }
  0xd1   : > { %744 = vmatpush2.bf16.msra.mxu0 %v2098_v41  ;;  %1350 = vmatprep.subr.bf16.mxu1 %v2165_v13 }
  0xd4   : > { %746 = vmatmul.mubr.bf16.vlgmr.msra.gmra.mxu0 %v2099_v42  ;;  %1351 = vmatpush2.bf16.msra.mxu1 %v2167_v14 }
  0xd5   : > { %755 = vmatprep.mubr.bf16.mxu0 %v2102_v43  ;;  %1352 = vmatprep.subr.bf16.mxu1 %v2168_v15 }
  0xd8   : > { %1353 = vmatpush2.bf16.msra.mxu1 %v2170_v16 }
  0xdc   : > { %756 = vmatmul.mubr.bf16.gmra.mxu0 %v2104_v44 }
  0xdd   : > { %765 = vmatprep.mubr.bf16.mxu0 %v2105_v45 }
  0xe4   : > { %766 = vmatmul.mubr.bf16.gmra.mxu0 %v2107_v46 }
  0xe5   : > { %775 = vmatprep.mubr.bf16.mxu0 %v2108_v47 }
  0xec   : > { %776 = vmatmul.mubr.bf16.gmra.mxu0 %v2110_v48 }
  0xed   : > { %785 = vmatprep.mubr.bf16.mxu0 %v2111_v49 }
  0xf4   : > { %786 = vmatmul.mubr.bf16.gmra.mxu0 %v2113_v50 }
  0xf5   : > { %795 = vmatprep.mubr.bf16.mxu0 %v2114_v51 }
  0xfc   : > { %796 = vmatmul.mubr.bf16.gmra.mxu0 %v2116_v52 }
  0xfd   : > { %805 = vmatprep.mubr.bf16.mxu0 %v2117_v53 }
 0x104   : > { %806 = vmatmul.mubr.bf16.gmra.mxu0 %v2119_v54 }
 0x105   : > { %815 = vmatprep.mubr.bf16.mxu0 %v2120_v55 }
 0x10c   : > { %816 = vmatmul.mubr.bf16.gmra.mxu0 %v2122_v56 }
 0x194   : > { %v747_v24 = vpop.f32.mrf.mxu0 }
 0x195   : > { %v2923_v25 = vadd.f32 %v747_v24, %v2916_v22 }
 0x196   : > { %v749_v26 = vpop.f32.mrf.mxu0 }
 0x197   : > { %v1849_v27 = vmul.f32 -1.702, %v2923_v25  ;;  %v2927_v28 = vadd.f32 %v749_v26, %v2920_v23 }
 0x198   : > { %v751_v29 = vpop.f32.mrf.mxu0 }
 0x199   : > { %v890_v30 = vmul.f32 1.442695, %v1849_v27  ;;  %v1850_v31 = vmul.f32 -1.702, %v2927_v28  ;;  %v2931_v32 = vadd.f32 %v751_v29, %v2916_v22 }
 0x19a   : > { %v753_v33 = vpop.f32.mrf.mxu0 }
 0x19b   : > { %2171 = vpow2.f32 %v890_v30  ;;  %v892_v34 = vmul.f32 1.442695, %v1850_v31  ;;  %v1851_v35 = vmul.f32 -1.702, %v2931_v32  ;;  %v2935_v36 = vadd.f32 %v753_v33, %v2920_v23 }
 0x19c   : > { %v757_v37 = vpop.f32.mrf.mxu0 }
 0x19d   : > { %2173 = vpow2.f32 %v892_v34  ;;  %v894_v38 = vmul.f32 1.442695, %v1851_v35  ;;  %v1852_v39 = vmul.f32 -1.702, %v2935_v36  ;;  %v2939_v40 = vadd.f32 %v757_v37, %v2916_v22 }
 0x19e   : > { %v759_v41 = vpop.f32.mrf.mxu0 }
 0x19f   : > { %2175 = vpow2.f32 %v894_v38  ;;  %v896_v42 = vmul.f32 1.442695, %v1852_v39  ;;  %v1853_v43 = vmul.f32 -1.702, %v2939_v40  ;;  %v2943_v44 = vadd.f32 %v759_v41, %v2920_v23 }
 0x1a0   : > { %v761_v45 = vpop.f32.mrf.mxu0 }
 0x1a1   : > { %2177 = vpow2.f32 %v896_v42  ;;  %v898_v46 = vmul.f32 1.442695, %v1853_v43  ;;  %v1854_v47 = vmul.f32 -1.702, %v2943_v44  ;;  %v2947_v48 = vadd.f32 %v761_v45, %v2916_v22 }
 0x1a2   : > { %v763_v49 = vpop.f32.mrf.mxu0 }
 0x1a3   : > { %2179 = vpow2.f32 %v898_v46  ;;  %v900_v50 = vmul.f32 1.442695, %v1854_v47  ;;  %v1855_v51 = vmul.f32 -1.702, %v2947_v48  ;;  %v2951_v52 = vadd.f32 %v763_v49, %v2920_v23 }
 0x1a4   : > { %v767_v53 = vpop.f32.mrf.mxu0 }
 0x1a5   : > { %2181 = vpow2.f32 %v900_v50  ;;  %v902_v54 = vmul.f32 1.442695, %v1855_v51  ;;  %v1856_v55 = vmul.f32 -1.702, %v2951_v52  ;;  %v2955_v56 = vadd.f32 %v767_v53, %v2916_v22 }
 0x1a6   : > { %v769_v57 = vpop.f32.mrf.mxu0 }
 0x1a7   : > { %2183 = vpow2.f32 %v902_v54  ;;  %v904_v58 = vmul.f32 1.442695, %v1856_v55  ;;  %v1857_v59 = vmul.f32 -1.702, %v2955_v56  ;;  %v2959_v60 = vadd.f32 %v769_v57, %v2920_v23 }
 0x1a8   : > { %v2172_v61 = vpop.eup %2171  ;;  %v771_v62 = vpop.f32.mrf.mxu0 }
 0x1a9   : > { %v954_v63 = vadd.f32 1.0, %v2172_v61  ;;  %2185 = vpow2.f32 %v904_v58  ;;  %v906_v0 = vmul.f32 1.442695, %v1857_v59  ;;  %v1858_v1 = vmul.f32 -1.702, %v2959_v60 }
 0x1aa   : > { %v2174_v2 = vpop.eup %2173  ;;  %v2963_v3 = vadd.f32 %v771_v62, %v2916_v22  ;;  %v773_v4 = vpop.f32.mrf.mxu0 }
 0x1ab   : > { %2187 = vrcp.f32 %v954_v63  ;;  %v955_v5 = vadd.f32 1.0, %v2174_v2  ;;  %v908_v6 = vmul.f32 1.442695, %v1858_v1  ;;  %v2966_v7 = vadd.f32 %v773_v4, %v2920_v23 }
 0x1ac   : > { %v2176_v8 = vpop.eup %2175  ;;  %2189 = vpow2.f32 %v906_v0  ;;  %v1859_v9 = vmul.f32 -1.702, %v2963_v3  ;;  %v777_v10 = vpop.f32.mrf.mxu0 }
 0x1ad   : > { %2191 = vrcp.f32 %v955_v5  ;;  %v956_v11 = vadd.f32 1.0, %v2176_v8  ;;  %v1860_v12 = vmul.f32 -1.702, %v2966_v7  ;;  %v2971_v13 = vadd.f32 %v777_v10, %v2916_v22 }
 0x1ae   : > { %v2178_v14 = vpop.eup %2177  ;;  %2193 = vpow2.f32 %v908_v6  ;;  %v910_v15 = vmul.f32 1.442695, %v1859_v9  ;;  %v779_v16 = vpop.f32.mrf.mxu0 }
 0x1af   : > { %2195 = vrcp.f32 %v956_v11  ;;  %v957_v17 = vadd.f32 1.0, %v2178_v14  ;;  %v912_v20 = vmul.f32 1.442695, %v1860_v12  ;;  %v1861_v24 = vmul.f32 -1.702, %v2971_v13 }
 0x1b0   : > { %v2180_v26 = vpop.eup %2179  ;;  %2197 = vpow2.f32 %v910_v15  ;;  %v2975_v27 = vadd.f32 %v779_v16, %v2920_v23  ;;  %v781_v29 = vpop.f32.mrf.mxu0 }
 0x1b1   : > { %2199 = vrcp.f32 %v957_v17  ;;  %v958_v30 = vadd.f32 1.0, %v2180_v26  ;;  %v914_v31 = vmul.f32 1.442695, %v1861_v24  ;;  %v2978_v33 = vadd.f32 %v781_v29, %v2916_v22 }
 0x1b2   : > { %v2182_v34 = vpop.eup %2181  ;;  %2201 = vpow2.f32 %v912_v20  ;;  %v1862_v35 = vmul.f32 -1.702, %v2975_v27  ;;  %v783_v37 = vpop.f32.mrf.mxu0 }
 0x1b3   : > { %2203 = vrcp.f32 %v958_v30  ;;  %v959_v38 = vadd.f32 1.0, %v2182_v34  ;;  %v1863_v39 = vmul.f32 -1.702, %v2978_v33  ;;  %v2983_v41 = vadd.f32 %v783_v37, %v2920_v23 }
 0x1b4   : > { %v2184_v42 = vpop.eup %2183  ;;  %2205 = vpow2.f32 %v914_v31  ;;  %v916_v43 = vmul.f32 1.442695, %v1862_v35  ;;  %v787_v45 = vpop.f32.mrf.mxu0 }
 0x1b5   : > { %2207 = vrcp.f32 %v959_v38  ;;  %v960_v46 = vadd.f32 1.0, %v2184_v42  ;;  %v918_v47 = vmul.f32 1.442695, %v1863_v39  ;;  %v1864_v49 = vmul.f32 -1.702, %v2983_v41 }
 0x1b6   : > { %v2186_v50 = vpop.eup %2185  ;;  %2209 = vpow2.f32 %v916_v43  ;;  %v2987_v51 = vadd.f32 %v787_v45, %v2916_v22  ;;  %v789_v53 = vpop.f32.mrf.mxu0 }
 0x1b7   : > { %2211 = vrcp.f32 %v960_v46  ;;  %v961_v54 = vadd.f32 1.0, %v2186_v50  ;;  %v920_v55 = vmul.f32 1.442695, %v1864_v49  ;;  %v2990_v57 = vadd.f32 %v789_v53, %v2920_v23 }
 0x1b8   : > { %v2188_v58 = vpop.eup %2187  ;;  %2213 = vpow2.f32 %v918_v47  ;;  %v1865_v59 = vmul.f32 -1.702, %v2987_v51  ;;  %v791_v61 = vpop.f32.mrf.mxu0 }
 0x1b9   : > { %v2190_v62 = vpop.eup %2189  ;;  %2215 = vrcp.f32 %v961_v54  ;;  %v1866_v63 = vmul.f32 -1.702, %v2990_v57  ;;  %v2995_v0 = vadd.f32 %v791_v61, %v2916_v22  ;;  %v1050_v46 = vmul.f32 %v2188_v58, %v2923_v25 }
 0x1ba   : > { %v2192_v1 = vpop.eup %2191  ;;  %v962_v2 = vadd.f32 1.0, %v2190_v62  ;;  %2217 = vpow2.f32 %v920_v55  ;;  %v922_v4 = vmul.f32 1.442695, %v1865_v59  ;;  %v793_v5 = vpop.f32.mrf.mxu0 }
 0x1bb   : > { %v2194_v6 = vpop.eup %2193  ;;  %v924_v8 = vmul.f32 1.442695, %v1866_v63  ;;  %v1867_v9 = vmul.f32 -1.702, %v2995_v0  ;;  %v2999_v10 = vadd.f32 %v793_v5, %v2920_v23  ;;  %v1051_v43 = vmul.f32 %v2192_v1, %v2927_v28 }
 0x1bc   : > { %v2196_v11 = vpop.eup %2195  ;;  %2219 = vrcp.f32 %v962_v2  ;;  %v963_v12 = vadd.f32 1.0, %v2194_v6  ;;  %v797_v14 = vpop.f32.mrf.mxu0 }
 0x1bd   : > { %v2198_v15 = vpop.eup %2197  ;;  %2221 = vpow2.f32 %v922_v4  ;;  %v926_v16 = vmul.f32 1.442695, %v1867_v9  ;;  %v1868_v17 = vmul.f32 -1.702, %v2999_v10  ;;  %v1052_v24 = vmul.f32 %v2196_v11, %v2931_v32 }
 0x1be   : > { %v2200_v20 = vpop.eup %2199  ;;  %2223 = vrcp.f32 %v963_v12  ;;  %v964_v26 = vadd.f32 1.0, %v2198_v15  ;;  %v3004_v29 = vadd.f32 %v797_v14, %v2916_v22  ;;  %v799_v30 = vpop.f32.mrf.mxu0 }
 0x1bf   : > { %v2202_v31 = vpop.eup %2201  ;;  %2225 = vpow2.f32 %v924_v8  ;;  %v928_v34 = vmul.f32 1.442695, %v1868_v17  ;;  %v3007_v35 = vadd.f32 %v799_v30, %v2920_v23  ;;  %v1053_v37 = vmul.f32 %v2200_v20, %v2935_v36 }
 0x1c0   : > { %v2204_v38 = vpop.eup %2203  ;;  %2227 = vrcp.f32 %v964_v26  ;;  %v965_v39 = vadd.f32 1.0, %v2202_v31  ;;  %v1869_v42 = vmul.f32 -1.702, %v3004_v29  ;;  %v801_v32 = vpop.f32.mrf.mxu0  ;;  %v1114_v62 = vpack.c.bf16 %v1052_v24, %v1050_v46 }
 0x1c1   : > { %v2206_v45 = vpop.eup %2205  ;;  %2229 = vpow2.f32 %v926_v16  ;;  %v1870_v47 = vmul.f32 -1.702, %v3007_v35  ;;  %v3015_v49 = vadd.f32 %v801_v32, %v2916_v22  ;;  %v1115_v55 = vpack.c.bf16 %v1053_v37, %v1051_v43 }
 0x1c2   : > { %v2208_v50 = vpop.eup %2207  ;;  %2231 = vrcp.f32 %v965_v39  ;;  %v966_v36 = vadd.f32 1.0, %v2206_v45  ;;  %v930_v53 = vmul.f32 1.442695, %v1869_v42  ;;  %v803_v54 = vpop.f32.mrf.mxu0  ;;  %v1054_v4 = vmul.f32 %v2204_v38, %v2939_v40 }
 0x1c3   : > { %v2210_v59 = vpop.eup %2209  ;;  %2233 = vpow2.f32 %v928_v34  ;;  %v932_v61 = vmul.f32 1.442695, %v1870_v47  ;;  %v1871_v28 = vmul.f32 -1.702, %v3015_v49  ;;  %v3019_v58 = vadd.f32 %v803_v54, %v2920_v23  ;;  %1354 = vmatprep.mubr.bf16.mxu1 %v1115_v55 }
 0x1c4   : > { %v2212_v63 = vpop.eup %2211  ;;  %2235 = vrcp.f32 %v966_v36  ;;  %v967_v25 = vadd.f32 1.0, %v2210_v59  ;;  %v807_v1 = vpop.f32.mrf.mxu0  ;;  %1355 = vmatmul.mubr.bf16.vlgmr.msra.gmra.mxu1 %v1114_v62  ;;  %v1055_v20 = vmul.f32 %v2208_v50, %v2943_v44 }
 0x1c5   : > { %v2214_v2 = vpop.eup %2213  ;;  %2237 = vpow2.f32 %v930_v53  ;;  %v934_v5 = vmul.f32 1.442695, %v1871_v28  ;;  %v3023_v6 = vadd.f32 %v807_v1, %v2916_v22  ;;  %v1056_v9 = vmul.f32 %v2212_v63, %v2947_v48 }
 0x1c6   : > { %v2216_v8 = vpop.eup %2215  ;;  %2239 = vrcp.f32 %v967_v25  ;;  %v968_v11 = vadd.f32 1.0, %v2214_v2  ;;  %v1872_v12 = vmul.f32 -1.702, %v3019_v58  ;;  %v809_v14 = vpop.f32.mrf.mxu0 }
 0x1c7   : > { %v2218_v15 = vpop.eup %2217  ;;  %v1057_v16 = vmul.f32 %v2216_v8, %v2951_v52  ;;  %2241 = vpow2.f32 %v932_v61  ;;  %v1873_v40 = vmul.f32 -1.702, %v3023_v6  ;;  %v3030_v17 = vadd.f32 %v809_v14, %v2920_v23 }
 0x1c8   : > { %2243 = vrcp.f32 %v968_v11  ;;  %v969_v24 = vadd.f32 1.0, %v2218_v15  ;;  %v936_v26 = vmul.f32 1.442695, %v1872_v12  ;;  %v811_v48 = vpop.f32.mrf.mxu0  ;;  %v1116_v42 = vpack.c.bf16 %v1056_v9, %v1054_v4 }
 0x1c9   : > { %v2220_v30 = vpop.eup %2219  ;;  %2245 = vpow2.f32 %v934_v5  ;;  %v938_v31 = vmul.f32 1.442695, %v1873_v40  ;;  %v1874_v34 = vmul.f32 -1.702, %v3030_v17  ;;  %v3035_v37 = vadd.f32 %v811_v48, %v2916_v22 }
 0x1ca   : > { %v2222_v52 = vpop.eup %2221  ;;  %2247 = vrcp.f32 %v969_v24  ;;  %v813_v38 = vpop.f32.mrf.mxu0  ;;  %v1117_v39 = vpack.c.bf16 %v1057_v16, %v1055_v20  ;;  %v1058_v61 = vmul.f32 %v2220_v30, %v2955_v56 }
 0x1cb   : > { %v2224_v32 = vpop.eup %2223  ;;  %v970_v43 = vadd.f32 1.0, %v2222_v52  ;;  %2249 = vpow2.f32 %v936_v26  ;;  %v940_v44 = vmul.f32 1.442695, %v1874_v34  ;;  %v1875_v45 = vmul.f32 -1.702, %v3035_v37 }
 0x1cc   : > { %v2226_v46 = vpop.eup %2225  ;;  %2251 = vpow2.f32 %v938_v31  ;;  %v3039_v47 = vadd.f32 %v813_v38, %v2920_v23  ;;  %1364 = vmatprep.mubr.bf16.mxu1 %v1117_v39  ;;  %v817_v50 = vpop.f32.mrf.mxu0  ;;  %v1059_v8 = vmul.f32 %v2224_v32, %v2959_v60 }
 0x1cd   : > { %v2228_v36 = vpop.eup %2227  ;;  %2253 = vrcp.f32 %v970_v43  ;;  %v971_v53 = vadd.f32 1.0, %v2226_v46  ;;  %v942_v54 = vmul.f32 1.442695, %v1875_v45  ;;  %v3042_v55 = vadd.f32 %v817_v50, %v2916_v22  ;;  %1365 = vmatmul.mubr.bf16.gmra.mxu1 %v1116_v42 }
 0x1ce   : > { %v2230_v59 = vpop.eup %2229  ;;  %v1060_v28 = vmul.f32 %v2228_v36, %v2963_v3  ;;  %2255 = vpow2.f32 %v940_v44  ;;  %v1876_v62 = vmul.f32 -1.702, %v3039_v47  ;;  %v819_v63 = vpop.f32.mrf.mxu0 }
 0x1cf   : > { %v2232_v25 = vpop.eup %2231  ;;  %2257 = vrcp.f32 %v971_v53  ;;  %v972_v1 = vadd.f32 1.0, %v2230_v59  ;;  %v1877_v2 = vmul.f32 -1.702, %v3042_v55  ;;  %v3049_v4 = vadd.f32 %v819_v63, %v2920_v23 }
 0x1d0   : > { %v2234_v5 = vpop.eup %2233  ;;  %v1061_v9 = vmul.f32 %v2232_v25, %v2966_v7  ;;  %2259 = vpow2.f32 %v942_v54  ;;  %v944_v56 = vmul.f32 1.442695, %v1876_v62  ;;  %v821_v3 = vpop.f32.mrf.mxu0  ;;  %v1118_v26 = vpack.c.bf16 %v1060_v28, %v1058_v61 }
 0x1d1   : > { %v2236_v11 = vpop.eup %2235  ;;  %2261 = vrcp.f32 %v972_v1  ;;  %v973_v12 = vadd.f32 1.0, %v2234_v5  ;;  %v946_v14 = vmul.f32 1.442695, %v1877_v2  ;;  %v1878_v15 = vmul.f32 -1.702, %v3049_v4 }
 0x1d2   : > { %v2238_v16 = vpop.eup %2237  ;;  %2263 = vpow2.f32 %v944_v56  ;;  %v3055_v40 = vadd.f32 %v821_v3, %v2916_v22  ;;  %v823_v20 = vpop.f32.mrf.mxu0  ;;  %v1119_v24 = vpack.c.bf16 %v1061_v9, %v1059_v8  ;;  %v1062_v53 = vmul.f32 %v2236_v11, %v2971_v13 }
 0x1d3   : > { %v2240_v60 = vpop.eup %2239  ;;  %2265 = vrcp.f32 %v973_v12  ;;  %v974_v7 = vadd.f32 1.0, %v2238_v16  ;;  %v948_v48 = vmul.f32 1.442695, %v1878_v15  ;;  %v3058_v30 = vadd.f32 %v823_v20, %v2920_v23 }
 0x1d4   : > { %v2242_v31 = vpop.eup %2241  ;;  %2267 = vpow2.f32 %v946_v14  ;;  %v1879_v34 = vmul.f32 -1.702, %v3055_v40  ;;  %1374 = vmatprep.mubr.bf16.mxu1 %v1119_v24  ;;  %v1063_v46 = vmul.f32 %v2240_v60, %v2975_v27 }
 0x1d5   : > { %v2244_v52 = vpop.eup %2243  ;;  %2269 = vrcp.f32 %v974_v7  ;;  %v975_v38 = vadd.f32 1.0, %v2242_v31  ;;  %v1880_v22 = vmul.f32 -1.702, %v3058_v30  ;;  %1375 = vmatmul.mubr.bf16.gmra.mxu1 %v1118_v26 }
 0x1d6   : > { %v2246_v39 = vpop.eup %2245  ;;  %2271 = vpow2.f32 %v948_v48  ;;  %v950_v42 = vmul.f32 1.442695, %v1879_v34  ;;  %v1064_v43 = vmul.f32 %v2244_v52, %v2978_v33 }
 0x1d7   : > { %v2248_v32 = vpop.eup %2247  ;;  %2273 = vrcp.f32 %v975_v38  ;;  %v976_v23 = vadd.f32 1.0, %v2246_v39  ;;  %v952_v44 = vmul.f32 1.442695, %v1880_v22 }
 0x1d8   : > { %v2250_v45 = vpop.eup %2249  ;;  %v1065_v50 = vmul.f32 %v2248_v32, %v2983_v41  ;;  %2275 = vpow2.f32 %v950_v42  ;;  %v1120_v33 = vpack.c.bf16 %v1064_v43, %v1062_v53 }
 0x1d9   : > { %v2252_v36 = vpop.eup %2251  ;;  %2277 = vrcp.f32 %v976_v23  ;;  %v977_v54 = vadd.f32 1.0, %v2250_v45 }
 0x1da   : > { %v2254_v59 = vpop.eup %2253  ;;  %2279 = vpow2.f32 %v952_v44  ;;  %v1121_v61 = vpack.c.bf16 %v1065_v50, %v1063_v46  ;;  %v978_v1 = vadd.f32 1.0, %v2252_v36 }
 0x1db   : > { %v2256_v28 = vpop.eup %2255  ;;  %2281 = vrcp.f32 %v977_v54  ;;  %v1066_v12 = vmul.f32 %v2254_v59, %v2987_v51 }
 0x1dc   : > { %v2258_v62 = vpop.eup %2257  ;;  %v979_v63 = vadd.f32 1.0, %v2256_v28  ;;  %1384 = vmatprep.mubr.bf16.mxu1 %v1121_v61  ;;  %v1083_v28 = vld [vmem:[#allocation2] sm:$0xff] }
 0x1dd   : > { %v2260_v25 = vpop.eup %2259  ;;  %1385 = vmatmul.mubr.bf16.gmra.mxu1 %v1120_v33  ;;  %v1067_v56 = vmul.f32 %v2258_v62, %v2990_v57 }
 0x1de   : > { %v2262_v27 = vpop.eup %2261  ;;  %v980_v41 = vadd.f32 1.0, %v2260_v25  ;;  %2283 = vrcp.f32 %v979_v63  ;;  %v1084_v63 = vld [vmem:[#allocation2 + $0xd8] sm:$0xff] }
 0x1df   : > { %v2264_v2 = vpop.eup %2263  ;;  %v1068_v13 = vmul.f32 %v2262_v27, %v2995_v0 }
 0x1e0   : > { %v2266_v5 = vpop.eup %2265  ;;  %2285 = vrcp.f32 %v980_v41  ;;  %v981_v8 = vadd.f32 1.0, %v2264_v2  ;;  %v1087_v2 = vld [vmem:[#allocation2 + $0x68] sm:$0xff] }
 0x1e1   : > { %v2268_v9 = vpop.eup %2267  ;;  %v1069_v3 = vmul.f32 %v2266_v5, %v2999_v10  ;;  %2287 = vrcp.f32 %v978_v1  ;;  %v1122_v24 = vpack.c.bf16 %v1068_v13, %v1066_v12 }
 0x1e2   : > { %v2270_v11 = vpop.eup %2269  ;;  %2289 = vrcp.f32 %v981_v8  ;;  %v982_v60 = vadd.f32 1.0, %v2268_v9  ;;  %v1088_v8 = vld [vmem:[#allocation2 + $0x30] sm:$0xff] }
 0x1e3   : > { %v2272_v14 = vpop.eup %2271  ;;  %v1123_v15 = vpack.c.bf16 %v1069_v3, %v1067_v56  ;;  %v1070_v52 = vmul.f32 %v2270_v11, %v3004_v29  ;;  %v1089_v3 = vld [vmem:[#allocation2 + $0x48] sm:$0xff] }
 0x1e4   : > { %v2274_v16 = vpop.eup %2273  ;;  %v983_v20 = vadd.f32 1.0, %v2272_v14  ;;  %v1090_v14 = vld [vmem:[#allocation2 + $0x80] sm:$0xff] }
 0x1e5   : > { %v2276_v26 = vpop.eup %2275  ;;  %1394 = vmatprep.mubr.bf16.mxu1 %v1123_v15  ;;  %v1071_v51 = vmul.f32 %v2274_v16, %v3007_v35 }
 0x1e6   : > { %v2278_v0 = vpop.eup %2277  ;;  %v984_v7 = vadd.f32 1.0, %v2276_v26  ;;  %1395 = vmatmul.mubr.bf16.gmra.mxu1 %v1122_v24  ;;  %2291 = vrcp.f32 %v983_v20  ;;  %v1091_v20 = vld [vmem:[#allocation2 + $0x88] sm:$0xff] }
 0x1e7   : > { %v2280_v48 = vpop.eup %2279  ;;  %v1072_v10 = vmul.f32 %v2278_v0, %v3015_v49 }
 0x1e8   : > { %v2282_v57 = vpop.eup %2281  ;;  %2293 = vrcp.f32 %v984_v7  ;;  %v985_v31 = vadd.f32 1.0, %v2280_v48  ;;  %v1093_v48 = vld [vmem:[#allocation2 + $0xb8] sm:$0xff] }
 0x1e9   : > { %v1073_v34 = vmul.f32 %v2282_v57, %v3019_v58  ;;  %2295 = vrcp.f32 %v982_v60  ;;  %v1124_v39 = vpack.c.bf16 %v1072_v10, %v1070_v52  ;;  %v1092_v60 = vld [vmem:[#allocation2 + $0xe8] sm:$0xff]  ;;  %v1095_v52 = vld [vmem:[#allocation2 + $0xf0] sm:$0xff] }
 0x1ea   : > { %2297 = vrcp.f32 %v985_v31  ;;  %v1094_v31 = vld [vmem:[#allocation2 + $0x60] sm:$0xff] }
 0x1eb   : > { %v1125_v38 = vpack.c.bf16 %v1073_v34, %v1071_v51  ;;  %v2284_v22 = vpop.eup %2283 }
 0x1ec   : > { %v1075_v49 = vmul.f32 %v2284_v22, %v3030_v17 }
 0x1ed   : > { %v2286_v42 = vpop.eup %2285  ;;  %1404 = vmatprep.mubr.bf16.mxu1 %v1125_v38 }
 0x1ee   : > { %v2288_v32 = vpop.eup %2287  ;;  %1405 = vmatmul.mubr.bf16.gmra.mxu1 %v1124_v39  ;;  %v1076_v23 = vmul.f32 %v2286_v42, %v3035_v37  ;;  %v1096_v39 = vld [vmem:[#allocation2 + $0x8] sm:$0xff] }
 0x1ef   : > { %v2290_v43 = vpop.eup %2289  ;;  %v1074_v58 = vmul.f32 %v2288_v32, %v3023_v6  ;;  %v1082_v6 = vld [vmem:[#allocation2 + $0xb0] sm:$0xff] }
 0x1f0   : > { %v1077_v35 = vmul.f32 %v2290_v43, %v3039_v47  ;;  %v1097_v43 = vld [vmem:[#allocation2 + $0x78] sm:$0xff] }
 0x1f1   : > { %v1126_v29 = vpack.c.bf16 %v1076_v23, %v1074_v58  ;;  %v1098_v58 = vld [vmem:[#allocation2 + $0x38] sm:$0xff] }
 0x1f2   : > { %v1127_v44 = vpack.c.bf16 %v1077_v35, %v1075_v49 }
 0x1f3   : > { %v2292_v45 = vpop.eup %2291 }
 0x1f4   : > { %1414 = vmatprep.mubr.bf16.mxu1 %v1127_v44  ;;  %v1079_v53 = vmul.f32 %v2292_v45, %v3049_v4  ;;  %v1085_v4 = vld [vmem:[#allocation2 + $0x18] sm:$0xff] }
 0x1f5   : > { %v2294_v46 = vpop.eup %2293  ;;  %v1099_v45 = vld [vmem:[#allocation2 + $0x58] sm:$0xff] }
 0x1f6   : > { %v2296_v50 = vpop.eup %2295  ;;  %1415 = vmatmul.mubr.bf16.gmra.mxu1 %v1126_v29  ;;  %v1080_v54 = vmul.f32 %v2294_v46, %v3055_v40 }
 0x1f7   : > { %v2298_v36 = vpop.eup %2297  ;;  %v1078_v37 = vmul.f32 %v2296_v50, %v3042_v55  ;;  %v1100_v50 = vld [vmem:[#allocation2 + $0x40] sm:$0xff] }
 0x1f8   : > { %v1081_v17 = vmul.f32 %v2298_v36, %v3058_v30  ;;  %v1086_v30 = vld [vmem:[#allocation2 + $0x50] sm:$0xff] }
 0x1f9   : > { %v1128_v47 = vpack.c.bf16 %v1080_v54, %v1078_v37  ;;  %v1101_v54 = vld [vmem:[#allocation2 + $0xc8] sm:$0xff] }
 0x1fa   : > { %v1129_v59 = vpack.c.bf16 %v1081_v17, %v1079_v53 }
 0x1fc   : > { %1424 = vmatprep.mubr.bf16.mxu1 %v1129_v59  ;;  %v1102_v59 = vld [vmem:[#allocation2 + $0xe0] sm:$0xff] }
 0x1fe   : > { %1425 = vmatmul.mubr.bf16.gmra.mxu1 %v1128_v47 }
 0x284   : > { %v1356_v61 = vpop.f32.mrf.mxu1 }
 0x285   : > { %v1435_v33 = vadd.f32 %v1356_v61, %v1082_v6  ;;  %v1103_v61 = vld [vmem:[#allocation2 + $0x90] sm:$0xff] }
 0x286   : > { %v1358_v62 = vpop.f32.mrf.mxu1 }
 0x287   : > { %1467 = vst [vmem:[#allocation2 + $0xb0] sm:$0xff] %v1435_v33  ;;  %v1436_v25 = vadd.f32 %v1358_v62, %v1083_v28  ;;  %v1104_v62 = vld [vmem:[#allocation2 + $0x70] sm:$0xff] }
 0x288   : > { %v1360_v1 = vpop.f32.mrf.mxu1 }
 0x289   : > { %1468 = vst [vmem:[#allocation2] sm:$0xff] %v1436_v25  ;;  %v1437_v40 = vadd.f32 %v1360_v1, %v1084_v63  ;;  %v1105_v1 = vld [vmem:[#allocation2 + $0xc0] sm:$0xff] }
 0x28a   : > { %v1362_v27 = vpop.f32.mrf.mxu1 }
 0x28b   : > { %1469 = vst [vmem:[#allocation2 + $0xd8] sm:$0xff] %v1437_v40  ;;  %v1438_v55 = vadd.f32 %v1362_v27, %v1085_v4  ;;  %v1106_v27 = vld [vmem:[#allocation2 + $0xa8] sm:$0xff] }
 0x28d   : > { %v1366_v41 = vpop.f32.mrf.mxu1  ;;  %1470 = vst [vmem:[#allocation2 + $0x18] sm:$0xff] %v1438_v55 }
 0x28e   : > { %v1439_v5 = vadd.f32 %v1366_v41, %v1086_v30  ;;  %v1107_v41 = vld [vmem:[#allocation2 + $0xd0] sm:$0xff] }
 0x28f   : > { %v1368_v13 = vpop.f32.mrf.mxu1 }
 0x290   : > { %1471 = vst [vmem:[#allocation2 + $0x50] sm:$0xff] %v1439_v5  ;;  %v1440_v9 = vadd.f32 %v1368_v13, %v1087_v2  ;;  %v1108_v13 = vld [vmem:[#allocation2 + $0x10] sm:$0xff] }
 0x291   : > { %v1370_v56 = vpop.f32.mrf.mxu1 }
 0x292   : > { %1472 = vst [vmem:[#allocation2 + $0x68] sm:$0xff] %v1440_v9  ;;  %v1441_v11 = vadd.f32 %v1370_v56, %v1088_v8  ;;  %v1109_v56 = vld [vmem:[#allocation2 + $0x28] sm:$0xff] }
 0x293   : > { %v1372_v12 = vpop.f32.mrf.mxu1 }
 0x294   : > { %1473 = vst [vmem:[#allocation2 + $0x30] sm:$0xff] %v1441_v11  ;;  %v1442_v15 = vadd.f32 %v1372_v12, %v1089_v3  ;;  %v1110_v12 = vld [vmem:[#allocation2 + $0xa0] sm:$0xff] }
 0x295   : > { %v1376_v16 = vpop.f32.mrf.mxu1 }
 0x296   : > { %1474 = vst [vmem:[#allocation2 + $0x48] sm:$0xff] %v1442_v15  ;;  %v1443_v24 = vadd.f32 %v1376_v16, %v1090_v14  ;;  %v1111_v16 = vld [vmem:[#allocation2 + $0xf8] sm:$0xff] }
 0x297   : > { %v1378_v26 = vpop.f32.mrf.mxu1 }
 0x298   : > { %1475 = vst [vmem:[#allocation2 + $0x80] sm:$0xff] %v1443_v24  ;;  %v1444_v0 = vadd.f32 %v1378_v26, %v1091_v20  ;;  %v1112_v26 = vld [vmem:[#allocation2 + $0x20] sm:$0xff] }
 0x299   : > { %v1380_v7 = vpop.f32.mrf.mxu1 }
 0x29a   : > { %1476 = vst [vmem:[#allocation2 + $0x88] sm:$0xff] %v1444_v0  ;;  %v1445_v57 = vadd.f32 %v1380_v7, %v1092_v60  ;;  %v1113_v7 = vld [vmem:[#allocation2 + $0x98] sm:$0xff] }
 0x29b   : > { %v1382_v10 = vpop.f32.mrf.mxu1 }
 0x29c   : > { %1477 = vst [vmem:[#allocation2 + $0xe8] sm:$0xff] %v1445_v57  ;;  %v1446_v51 = vadd.f32 %v1382_v10, %v1093_v48 }
 0x29d   : > { %v1386_v34 = vpop.f32.mrf.mxu1 }
 0x29e   : > { %1478 = vst [vmem:[#allocation2 + $0xb8] sm:$0xff] %v1446_v51  ;;  %v1447_v38 = vadd.f32 %v1386_v34, %v1094_v31 }
 0x29f   : > { %v1388_v22 = vpop.f32.mrf.mxu1 }
 0x2a0   : > { %1479 = vst [vmem:[#allocation2 + $0x60] sm:$0xff] %v1447_v38  ;;  %v1448_v42 = vadd.f32 %v1388_v22, %v1095_v52 }
 0x2a1   : > { %v1390_v32 = vpop.f32.mrf.mxu1 }
 0x2a2   : > { %1480 = vst [vmem:[#allocation2 + $0xf0] sm:$0xff] %v1448_v42  ;;  %v1449_v49 = vadd.f32 %v1390_v32, %v1096_v39 }
 0x2a3   : > { %v1392_v23 = vpop.f32.mrf.mxu1 }
 0x2a4   : > { %1481 = vst [vmem:[#allocation2 + $0x8] sm:$0xff] %v1449_v49  ;;  %v1450_v35 = vadd.f32 %v1392_v23, %v1097_v43 }
 0x2a6   : > { %1482 = vst [vmem:[#allocation2 + $0x78] sm:$0xff] %v1450_v35  ;;  %v1396_v44 = vpop.f32.mrf.mxu1 }
 0x2a7   : > { %v1451_v29 = vadd.f32 %v1396_v44, %v1098_v58 }
 0x2a8   : > { %v1398_v46 = vpop.f32.mrf.mxu1 }
 0x2a9   : > { %1483 = vst [vmem:[#allocation2 + $0x38] sm:$0xff] %v1451_v29  ;;  %v1452_v36 = vadd.f32 %v1398_v46, %v1099_v45 }
 0x2aa   : > { %v1400_v53 = vpop.f32.mrf.mxu1 }
 0x2ab   : > { %1484 = vst [vmem:[#allocation2 + $0x58] sm:$0xff] %v1452_v36  ;;  %v1453_v17 = vadd.f32 %v1400_v53, %v1100_v50 }
 0x2ac   : > { %v1402_v37 = vpop.f32.mrf.mxu1 }
 0x2ad   : > { %1485 = vst [vmem:[#allocation2 + $0x40] sm:$0xff] %v1453_v17  ;;  %v1454_v47 = vadd.f32 %v1402_v37, %v1101_v54 }
 0x2ae   : > { %v1406_v6 = vpop.f32.mrf.mxu1 }
 0x2af   : > { %1486 = vst [vmem:[#allocation2 + $0xc8] sm:$0xff] %v1454_v47  ;;  %v1455_v28 = vadd.f32 %v1406_v6, %v1102_v59 }
 0x2b0   : > { %v1408_v33 = vpop.f32.mrf.mxu1 }
 0x2b1   : > { %1487 = vst [vmem:[#allocation2 + $0xe0] sm:$0xff] %v1455_v28  ;;  %v1456_v63 = vadd.f32 %v1408_v33, %v1103_v61 }
 0x2b2   : > { %v1410_v25 = vpop.f32.mrf.mxu1 }
 0x2b3   : > { %1488 = vst [vmem:[#allocation2 + $0x90] sm:$0xff] %v1456_v63  ;;  %v1457_v4 = vadd.f32 %v1410_v25, %v1104_v62 }
 0x2b4   : > { %v1412_v40 = vpop.f32.mrf.mxu1 }
 0x2b5   : > { %1489 = vst [vmem:[#allocation2 + $0x70] sm:$0xff] %v1457_v4  ;;  %v1458_v30 = vadd.f32 %v1412_v40, %v1105_v1 }
 0x2b6   : > { %v1416_v55 = vpop.f32.mrf.mxu1 }
 0x2b7   : > { %1490 = vst [vmem:[#allocation2 + $0xc0] sm:$0xff] %v1458_v30  ;;  %v1459_v2 = vadd.f32 %v1416_v55, %v1106_v27 }
 0x2b8   : > { %v1418_v5 = vpop.f32.mrf.mxu1 }
 0x2b9   : > { %1491 = vst [vmem:[#allocation2 + $0xa8] sm:$0xff] %v1459_v2  ;;  %v1460_v8 = vadd.f32 %v1418_v5, %v1107_v41 }
 0x2ba   : > { %v1420_v9 = vpop.f32.mrf.mxu1 }
 0x2bb   : > { %1492 = vst [vmem:[#allocation2 + $0xd0] sm:$0xff] %v1460_v8  ;;  %v1461_v3 = vadd.f32 %v1420_v9, %v1108_v13 }
 0x2bc   : > { %v1422_v11 = vpop.f32.mrf.mxu1 }
 0x2bd   : > { %1493 = vst [vmem:[#allocation2 + $0x10] sm:$0xff] %v1461_v3  ;;  %v1462_v14 = vadd.f32 %v1422_v11, %v1109_v56 }
 0x2be   : > { %v1426_v15 = vpop.f32.mrf.mxu1 }
 0x2bf   : > { %1494 = vst [vmem:[#allocation2 + $0x28] sm:$0xff] %v1462_v14  ;;  %v1463_v20 = vadd.f32 %v1426_v15, %v1110_v12 }
 0x2c0   : > { %v1428_v24 = vpop.f32.mrf.mxu1 }
 0x2c1   : > { %1495 = vst [vmem:[#allocation2 + $0xa0] sm:$0xff] %v1463_v20  ;;  %v1464_v60 = vadd.f32 %v1428_v24, %v1111_v16 }
 0x2c2   : > { %v1430_v0 = vpop.f32.mrf.mxu1 }
 0x2c3   : > { %1496 = vst [vmem:[#allocation2 + $0xf8] sm:$0xff] %v1464_v60  ;;  %v1465_v48 = vadd.f32 %v1430_v0, %v1112_v26  ;;  %1502 = sbr.rel (%p1913_p8) target bundleno = 733 (0x2dd), region = 64 }
 0x2c4   : > { %v1432_v57 = vpop.f32.mrf.mxu1 }
 0x2c5   : > { %1497 = vst [vmem:[#allocation2 + $0x20] sm:$0xff] %v1465_v48  ;;  %v1466_v10 = vadd.f32 %v1432_v57, %v1113_v7 }
 0x2c7   : > { %1498 = vst [vmem:[#allocation2 + $0x98] sm:$0xff] %v1466_v10 }
 0x2c8   : > { %v1503_v31 = vld [vmem:[#allocation2 + $0xb0] sm:$0xff]  ;;  %v1535_v51 = vld [vmem:[%s3281_s1] sm:$0x3]  ;;  %v1505_v22 = vld [vmem:[#allocation2 + $0xd8] sm:$0xff] }
 0x2c9   : > { %v1504_v34 = vld [vmem:[#allocation2] sm:$0xff]  ;;  %v3088_v52 = vrot.slane %v1535_v51, %v465_v19  ;;  %v3092_v38 = vrot.slane %v1535_v51, %v469_v21  ;;  %v1506_v39 = vld [vmem:[#allocation2 + $0x18] sm:$0xff]  ;;  %v1507_v42 = vld [vmem:[#allocation2 + $0x50] sm:$0xff] }
 0x2ca   : > { %v1508_v32 = vld [vmem:[#allocation2 + $0x68] sm:$0xff]  ;;  %v1509_v43 = vld [vmem:[#allocation2 + $0x30] sm:$0xff]  ;;  %v1511_v21 = vld [vmem:[#allocation2 + $0x80] sm:$0xff] }
 0x2cb   : > { %v1510_v49 = vld [vmem:[#allocation2 + $0x48] sm:$0xff]  ;;  %v1547_v23 = vadd.f32 %v3088_v52, %v1503_v31  ;;  %v1548_v35 = vadd.f32 %v3092_v38, %v1504_v34  ;;  %v1549_v19 = vadd.f32 %v3088_v52, %v1505_v22  ;;  %v1550_v18 = vadd.f32 %v3092_v38, %v1506_v39  ;;  %v1514_v36 = vld [vmem:[#allocation2 + $0xb8] sm:$0xff]  ;;  %v1515_v53 = vld [vmem:[#allocation2 + $0x60] sm:$0xff] }
 0x2cc   : > { %v1512_v58 = vld [vmem:[#allocation2 + $0x88] sm:$0xff]  ;;  %v1551_v45 = vadd.f32 %v3088_v52, %v1507_v42  ;;  %v1552_v29 = vadd.f32 %v3092_v38, %v1508_v32  ;;  %v1553_v46 = vadd.f32 %v3088_v52, %v1509_v43  ;;  %v1554_v50 = vadd.f32 %v3092_v38, %v1510_v49  ;;  %v1516_v54 = vld [vmem:[#allocation2 + $0xf0] sm:$0xff]  ;;  %v1518_v61 = vld [vmem:[#allocation2 + $0x78] sm:$0xff] }
 0x2cd   : > { %v1513_v44 = vld [vmem:[#allocation2 + $0xe8] sm:$0xff]  ;;  %1579 = vst [vmem:[%s2826_s9] sm:$0xff] %v1547_v23  ;;  %1580 = vst [vmem:[%s2826_s9 + $0x8] sm:$0xff] %v1548_v35  ;;  %v1555_v17 = vadd.f32 %v3088_v52, %v1511_v21  ;;  %v1556_v37 = vadd.f32 %v3092_v38, %v1512_v58  ;;  %v1558_v47 = vadd.f32 %v3092_v38, %v1514_v36  ;;  %v1519_v28 = vld [vmem:[#allocation2 + $0x38] sm:$0xff] }
 0x2ce   : > { %1581 = vst [vmem:[%s2826_s9 + $0x10] sm:$0xff] %v1549_v19  ;;  %1582 = vst [vmem:[%s2826_s9 + $0x18] sm:$0xff] %v1550_v18  ;;  %v1557_v59 = vadd.f32 %v3088_v52, %v1513_v44  ;;  %v1517_v6 = vld [vmem:[#allocation2 + $0x8] sm:$0xff]  ;;  %v1559_v33 = vadd.f32 %v3088_v52, %v1515_v53  ;;  %v1560_v62 = vadd.f32 %v3092_v38, %v1516_v54  ;;  %v1520_v1 = vld [vmem:[#allocation2 + $0x58] sm:$0xff] }
 0x2cf   : > { %1583 = vst [vmem:[%s2826_s9 + $0x20] sm:$0xff] %v1551_v45  ;;  %1584 = vst [vmem:[%s2826_s9 + $0x28] sm:$0xff] %v1552_v29  ;;  %v1561_v63 = vadd.f32 %v3088_v52, %v1517_v6  ;;  %v1562_v25 = vadd.f32 %v3092_v38, %v1518_v61  ;;  %v1521_v4 = vld [vmem:[#allocation2 + $0x40] sm:$0xff]  ;;  %v1522_v40 = vld [vmem:[#allocation2 + $0xc8] sm:$0xff]  ;;  %v1563_v27 = vadd.f32 %v3088_v52, %v1519_v28 }
 0x2d0   : > { %1585 = vst [vmem:[%s2826_s9 + $0x30] sm:$0xff] %v1553_v46  ;;  %1586 = vst [vmem:[%s2826_s9 + $0x38] sm:$0xff] %v1554_v50  ;;  %v1564_v30 = vadd.f32 %v3092_v38, %v1520_v1  ;;  %v1565_v55 = vadd.f32 %v3088_v52, %v1521_v4  ;;  %v1566_v41 = vadd.f32 %v3092_v38, %v1522_v40  ;;  %v1523_v2 = vld [vmem:[#allocation2 + $0xe0] sm:$0xff]  ;;  %v1524_v5 = vld [vmem:[#allocation2 + $0x90] sm:$0xff] }
 0x2d1   : > { %1587 = vst [vmem:[%s2826_s9 + $0x40] sm:$0xff] %v1555_v17  ;;  %1588 = vst [vmem:[%s2826_s9 + $0x48] sm:$0xff] %v1556_v37  ;;  %v1525_v13 = vld [vmem:[#allocation2 + $0x70] sm:$0xff]  ;;  %v1567_v8 = vadd.f32 %v3088_v52, %v1523_v2  ;;  %v1568_v9 = vadd.f32 %v3092_v38, %v1524_v5  ;;  %v1526_v3 = vld [vmem:[#allocation2 + $0xc0] sm:$0xff] }
 0x2d2   : > { %1589 = vst [vmem:[%s2826_s9 + $0x50] sm:$0xff] %v1557_v59  ;;  %1590 = vst [vmem:[%s2826_s9 + $0x58] sm:$0xff] %v1558_v47  ;;  %v1569_v56 = vadd.f32 %v3088_v52, %v1525_v13  ;;  %v1527_v11 = vld [vmem:[#allocation2 + $0xa8] sm:$0xff]  ;;  %v1528_v12 = vld [vmem:[#allocation2 + $0xd0] sm:$0xff]  ;;  %v1570_v14 = vadd.f32 %v3092_v38, %v1526_v3 }
 0x2d3   : > { %1591 = vst [vmem:[%s2826_s9 + $0x60] sm:$0xff] %v1559_v33  ;;  %1592 = vst [vmem:[%s2826_s9 + $0x68] sm:$0xff] %v1560_v62  ;;  %v1571_v15 = vadd.f32 %v3088_v52, %v1527_v11  ;;  %v1572_v16 = vadd.f32 %v3092_v38, %v1528_v12  ;;  %v1529_v20 = vld [vmem:[#allocation2 + $0x10] sm:$0xff]  ;;  %v1530_v24 = vld [vmem:[#allocation2 + $0x28] sm:$0xff] }
 0x2d4   : > { %1593 = vst [vmem:[%s2826_s9 + $0x70] sm:$0xff] %v1561_v63  ;;  %1594 = vst [vmem:[%s2826_s9 + $0x78] sm:$0xff] %v1562_v25  ;;  %v1531_v26 = vld [vmem:[#allocation2 + $0xa0] sm:$0xff]  ;;  %v1573_v60 = vadd.f32 %v3088_v52, %v1529_v20  ;;  %v1574_v0 = vadd.f32 %v3092_v38, %v1530_v24  ;;  %v1532_v48 = vld [vmem:[#allocation2 + $0xf8] sm:$0xff] }
 0x2d5   : > { %1595 = vst [vmem:[%s2826_s9 + $0x80] sm:$0xff] %v1563_v27  ;;  %1596 = vst [vmem:[%s2826_s9 + $0x88] sm:$0xff] %v1564_v30  ;;  %v1575_v7 = vadd.f32 %v3088_v52, %v1531_v26  ;;  %v1533_v57 = vld [vmem:[#allocation2 + $0x20] sm:$0xff]  ;;  %v1534_v10 = vld [vmem:[#allocation2 + $0x98] sm:$0xff]  ;;  %v1576_v31 = vadd.f32 %v3092_v38, %v1532_v48 }
 0x2d6   : > { %1597 = vst [vmem:[%s2826_s9 + $0x90] sm:$0xff] %v1565_v55  ;;  %1598 = vst [vmem:[%s2826_s9 + $0x98] sm:$0xff] %v1566_v41  ;;  %v1577_v51 = vadd.f32 %v3088_v52, %v1533_v57  ;;  %v1578_v34 = vadd.f32 %v3092_v38, %v1534_v10 }
 0x2d7   : > { %1599 = vst [vmem:[%s2826_s9 + $0xa0] sm:$0xff] %v1567_v8  ;;  %1600 = vst [vmem:[%s2826_s9 + $0xa8] sm:$0xff] %v1568_v9 }
 0x2d8   : > { %1601 = vst [vmem:[%s2826_s9 + $0xb0] sm:$0xff] %v1569_v56  ;;  %1602 = vst [vmem:[%s2826_s9 + $0xb8] sm:$0xff] %v1570_v14 }
 0x2d9   : > { %1603 = vst [vmem:[%s2826_s9 + $0xc0] sm:$0xff] %v1571_v15  ;;  %1604 = vst [vmem:[%s2826_s9 + $0xc8] sm:$0xff] %v1572_v16 }
 0x2da   : > { %1605 = vst [vmem:[%s2826_s9 + $0xd0] sm:$0xff] %v1573_v60  ;;  %1606 = vst [vmem:[%s2826_s9 + $0xd8] sm:$0xff] %v1574_v0 }
 0x2db   : > { %1607 = vst [vmem:[%s2826_s9 + $0xe0] sm:$0xff] %v1575_v7  ;;  %1608 = vst [vmem:[%s2826_s9 + $0xe8] sm:$0xff] %v1576_v31 }
 0x2dc   : > { %1609 = vst [vmem:[%s2826_s9 + $0xf0] sm:$0xff] %v1577_v51  ;;  %1610 = vst [vmem:[%s2826_s9 + $0xf8] sm:$0xff] %v1578_v34 }
 0x2dd PF: > { %s3282_s24 = sld [smem:[#allocation19_spill]]  ;;  %s1626_s0 = sshll.u32 %s2826_s9, 4  ;;  %s3165_s0 = int_to_ptr.vmem [resolvable:$true] %s1626_s0 }
 0x2de   : > { %s3283_s8 = sld [smem:[#allocation30_spill]]  ;;  %s1612_s15 = scalar_lea.sflag [#allocation5], %s2799_s6 }
 0x2df   : > { %s2411_s20 = scalar_lea.vmem %s3165_s0, 4096  ;;  %s2549_s11 = smov [#allocation11]  }
 0x2e0   : > { %p2412_p1 = scmp.ne.s32.totalorder %s3165_s0, %s2411_s20  ;;  %s2415_s14 = sshll.u32 %s2549_s11, 4  ;;  %s2416_s14 = int_to_ptr.vmem [resolvable:$false] %s2415_s14 }
 0x2e1   : > { %s2417_s16 = scalar_lea.vmem %s2416_s14, 8192  ;;  %p2418_p2 = scmp.lt.s32.totalorder %s3165_s0, %s2416_s14 }
 0x2e2   : > { %p2413_p0 = pnand %p2412_p1, %p2740_p13  ;;  %p2419_p3 = scmp.lt.s32.totalorder %s2417_s16, %s2411_s20 }
 0x2e3   : > { %s1927_s7 = sshll.u32 %s3282_s24, 12 }
 0x2e4   : > { %s3162_s27 = scalar_lea.hbm %s3283_s8, %s1927_s7  ;;  %p2414_p6 = pneg %p2413_p0 }
 0x2e5   : > { %p2420_p4 = por %p2419_p3, %p2418_p2 }
 0x2e7   : > { %p2421_p10 = pnand %p2420_p4, %p2414_p6 }
 0x2e9   : > { %2424 = shalt.err (!%p2421_p10)
}
 0x2ea   : > { %s2425_s12 = scalar_lea.hbm %s3162_s27, 4096  ;;  %s2429_s4 = scalar_lea.hbm %s3283_s8, 8192 }
 0x2eb   : > { %p2426_p11 = scmp.ne.s32.totalorder %s3162_s27, %s2425_s12  ;;  %p2430_p7 = scmp.lt.s32.totalorder %s3162_s27, %s3283_s8 }
 0x2ec   : > { %p2431_p5 = scmp.lt.s32.totalorder %s2429_s4, %s2425_s12 }
 0x2ed   : > { %p2427_p12 = pnand %p2426_p11, %p2740_p13 }
 0x2ee   : > { %p2432_p8 = por %p2431_p5, %p2430_p7 }
 0x2ef   : > { %p2428_p9 = pneg %p2427_p12 }
 0x2f1   : > { %p2433_p1 = pnand %p2432_p8, %p2428_p9 }
 0x2f3   : > { %2436 = shalt.err (!%p2433_p1)
}
 0x2f4   : > { %s2550_s23 = smov 256   ;;  %s2551_s17 = smov 16  }
 0x2f5   : > { %1936 = dma.vmem_to_hbm [thread:$0]  (%p2740_p13), %s3165_s0, 4096, %s3162_s27, %s1612_s15, %s2550_s23, %s2550_s23, %s2551_s17  }
 0x2f6 PF: > { %s3284_s9 = sld [smem:[#allocation21_spill]] }
 0x2f7   : > { %s3285_s5 = sld [smem:[#allocation17_spill]] }
 0x2f8   : > { %s3286_s18 = sld [smem:[#allocation26_spill]] }
 0x2fc   : > { %p1956_p0 = scmp.ge.s32.totalorder %s3284_s9, 2 }
 0x2fd   : > { %s1641_s1 = sand.u32 1, %s3285_s5  }
 0x2fe   : > { %p3287_p6 = scmp.ne.s32.totalorder %s3286_s18, 0  ;;  %s1642_s24 = scalar_lea.sflag [#allocation5], %s1641_s1 }
 0x300   : > { %p1952_p2 = pnand %p1956_p0, %p3287_p6 }
 0x302   : > { %p1953_p3 = pneg %p1952_p2 }
 0x304   : > { %2494 = dma.done.wait (%p1953_p3), %s1642_s24, 4096  }
 0x305   : > { %2496 = vsyncadd (%p1953_p3), %s1642_s24, 4294963200  ;;  %s27_s28 = sadd.s32 1, %s3284_s9   ;;  %s3288_s7 = sld [smem:[#allocation16_spill]] }
 0x306   : > { %p24_p4 = scmp.ge.s32.totalorder %s27_s28, 6   ;;  %s3289_s20 = sld [smem:[#allocation24_spill]] }
 0x307   : > { %s3290_s29 = sld [smem:[#allocation18_spill]]  ;;  %s3295_s18 = smov %s2503_s19 }
 0x308   : > { %s3291_s23 = sld [smem:[#allocation25_spill]]  ;;  %s3297_s21 = smov %s2515_s22 }
 0x309   : > { %s3292_s25 = sld [smem:[#allocation20_spill]]  ;;  %s3299_s24 = smov %s2531_s26 }
 0x30a   : > { %s3293_s6 = sld [smem:[#allocation22_spill]] }
 0x30b   : > { %s3294_s27 = sld [smem:[#allocation23_spill]]  ;;  %s3296_s19 = smov %s3288_s7 }
 0x30c   :  { %26 = sbr.rel (!%p24_p4) target bundleno = 18 (0x12), region = 130 }
 0x30d   : > { %s3298_s22 = smov %s3290_s29 }
 0x310   : > { %s3300_s26 = smov %s3293_s6 }
 0x311   :  { %1647 = vsyncpa [#allocation4], 1 }
 0x312   :  { %1649 = vsyncpa [#allocation4 + $0x1], 1 }
 0x313   :  { %1650 = vsyncpa [#allocation7], 1 }
 0x314   :  { %1652 = vsyncpa [#allocation7 + $0x1], 1 }
 0x315   :  { %1653 = vsyncpa [#allocation10], 1 }
 0x316   :  { %1655 = vsyncpa [#allocation10 + $0x1], 1 }
 0x317   :  { %1656 = vsyncpa [#allocation5], 1 }
 0x318   :  { %1658 = vsyncpa [#allocation5 + $0x1], 1 }

</bundles_post_ra>
